<compile_context>
chip_gen: v5e
topology: v5e:2x2
jax: 0.10.0
libtpu: 0.0.40
codegen_flags: <defaults>
</compile_context>

<pallas_src>
import numpy as np
import jax
import jax.numpy as jnp
from jax import lax
from jax.experimental import pallas as pl
from jax.experimental.pallas import tpu as pltpu

_LANES = 128


def _round_up(v, m):
    return (v + m - 1) // m * m


def _vmem_capacity_bytes():
    """Physical VMEM per TensorCore (generation-aware), with a safe fallback."""
    try:
        return int(pltpu.get_tpu_info().vmem_capacity_bytes)
    except Exception:
        return 64 * 1024 * 1024          # conservative: v7x per-TC size


def _choose_row_tile(H, W, Ho, Wo, cp, hidp, coutp, stride, dw_bytes, vmem_limit):
    """Pick output rows per grid step so double-buffered I/O + in-kernel
    intermediates stay well inside the scoped VMEM limit."""
    bf16 = 2
    per_row = (
        2 * (stride * W * cp) * bf16             # input body rows (double-buffered)
        + 2 * (Wo * coutp) * bf16                # output rows (double-buffered)
        + 2 * (stride * W * hidp) * dw_bytes     # h + one live shifted copy
        + (Wo * hidp) * 4                        # f32 depthwise accumulator / d
        + (Wo * hidp) * bf16 + (Wo * coutp) * 4  # projection operand / result
    )
    fixed = (
        2 * (cp * hidp + hidp * coutp + 9 * hidp + 2 * hidp + coutp) * 4
        + 2 * (3 - stride) * W * cp * bf16       # halo rows (double-buffered)
        + (2 << 20)                              # slack for compiler temporaries
    )
    budget = int(vmem_limit * 0.6)
    th = (budget - fixed) // max(per_row, 1)
    th = int(max(1, min(th, Ho, 256)))
    for cand in range(th, 0, -1):                # prefer a divisor of Ho (no ragged tail)
        if Ho % cand == 0:
            if 2 * cand >= th:
                th = cand
            break
    return th


def _make_kernel(*, H, W, TH, stride, cp, hidp, coutp, has_expand, use_res, dw_dtype):
    """Fused kernel for one (batch, row-tile) grid step.  Channel dims already padded
    to multiples of 128; the input window is the concat of body + halo row blocks."""
    s = stride
    TH_in = (TH - 1) * s + 3                     # input window rows (3x3 conv, pad=1)
    Wo = (W - 1) // s + 1
    row_span = (TH - 1) * s + 1
    n_halo = 3 - s
    need_last_mask = (s == 1) or (W % 2 == 1)

    def kernel(*refs):
        i = 0
        body = refs[i][0]; i += 1                               # (TH*s, W, cp) bf16
        halos = [refs[i + j][0] for j in range(n_halo)]; i += n_halo
        if has_expand:
            w1_ref, b1_ref = refs[i], refs[i + 1]; i += 2
        wdw_ref, b2_ref = refs[i], refs[i + 1]; i += 2
        w3_ref, b3_ref = refs[i], refs[i + 1]; i += 2
        o_ref = refs[i]

        t = pl.program_id(1)
        win = jnp.concatenate([body] + halos, axis=0)           # (TH_in, W, cp)

        # ---- stage 1: 1x1 expand conv (MXU, bf16 x bf16 -> f32 acc) + bias + ReLU6.
        # BN scale is pre-folded into w1.  Rows that correspond to the 3x3 conv's zero
        # padding must stay exactly zero *after* the bias/clip, so mask them.
        if has_expand:
            h = jnp.dot(win.reshape(TH_in * W, cp), w1_ref[...],
                        preferred_element_type=jnp.float32)
            h = jnp.clip(h + b1_ref[...], 0.0, 6.0)
            h = h.reshape(TH_in, W, hidp).astype(dw_dtype)
            prow = t * (TH * s) + lax.broadcasted_iota(jnp.int32, (TH_in, W, hidp), 0)
            h = jnp.where(jnp.logical_and(prow >= 1, prow <= H), h,
                          jnp.zeros((), dw_dtype))
        else:
            h = win.astype(dw_dtype)             # hidp == cp; padded rows already zero

        # ---- stage 2: 3x3 depthwise conv (pad=1, stride) + bias + ReLU6 (VPU).
        # Only one W-shifted copy live at a time; for stride 2 subsample columns
        # before masking and skip the "last column" mask when W is even.
        wdw = wdw_ref[...]                                      # (9, hidp), BN folded
        col = lax.broadcasted_iota(jnp.int32, (1, Wo, hidp), 1)
        mask_first = (col > 0).astype(dw_dtype)
        mask_last = (col < Wo - 1).astype(dw_dtype) if need_last_mask else None

        acc = jnp.zeros((TH, Wo, hidp), jnp.float32)
        for dj in range(3):
            if dj == 0:
                sh = pltpu.roll(h, shift=1, axis=1)             # out col j <- src col j-1
            elif dj == 1:
                sh = h
            else:
                sh = pltpu.roll(h, shift=W - 1, axis=1)         # out col j <- src col j+1
            if s == 2:                                          # keep only needed columns
                if W % 2 == 0:
                    sh = sh.reshape(TH_in, W // 2, 2, hidp)[:, :, 0, :]
                else:
                    sh = lax.slice(sh, (0, 0, 0), (TH_in, W, hidp), (1, 2, 1))
            if dj == 0:
                sh = sh * mask_first                            # src col -1 -> zero
            elif dj == 2 and need_last_mask:
                sh = sh * mask_last                             # src col W  -> zero
            for di in range(3):
                tap = wdw[di * 3 + dj:di * 3 + dj + 1, :]       # (1, hidp)
                acc = acc + sh[di:di + row_span:s] * tap
        d = jnp.clip(acc + b2_ref[...], 0.0, 6.0)               # (TH, Wo, hidp) f32

        # ---- stage 3: 1x1 projection conv (MXU) + bias (BN scale folded), linear.
        p = jnp.dot(d.reshape(TH * Wo, hidp).astype(jnp.bfloat16), w3_ref[...],
                    preferred_element_type=jnp.float32)
        p = (p + b3_ref[...]).reshape(TH, Wo, coutp)

        if use_res:                                             # s == 1, cp == coutp
            p = p + win[1:TH + 1].astype(jnp.float32)
        o_ref[0] = p.astype(o_ref.dtype)

    return kernel


def inverted_residual_pallas_nhwc(x, w1, s1, b1, wdw, s2, b2, w3, s3, b3, *,
                                  stride, expand_ratio, row_tile=None,
                                  dw_dtype=jnp.float32, out_dtype=jnp.bfloat16,
                                  trim_output=True):
    """NHWC fused InvertedResidual (eval-mode BN folded into scale/bias).

    x: (N, H, W, Cin).  Kernel-layout weights: w1:(Cin,Hid), wdw:(9,Hid), w3:(Hid,Cout).
    s*/b*: folded BatchNorm scale/bias vectors.  Returns bf16 NHWC; channels stay padded
    to a multiple of 128 (lane-dense interchange layout) unless trim_output=True.
    """
    N, H, W, cin = x.shape
    hid, cout = w3.shape
    assert stride in (1, 2)
    has_expand = expand_ratio != 1
    if not has_expand:
        assert hid == cin, "expand_ratio == 1 requires hidden_dim == inp"
    use_res = stride == 1 and cin == cout

    cp = _round_up(cin, _LANES)
    hidp = _round_up(hid, _LANES)
    coutp = _round_up(cout, _LANES)
    s = stride
    Ho = (H - 1) // s + 1
    Wo = (W - 1) // s + 1

    # Generation-aware VMEM budget and row-tile size.
    vmem_cap = _vmem_capacity_bytes()
    vmem_limit = max(32 << 20, min(int(vmem_cap * 0.7), 100 << 20))
    dw_bytes = jnp.dtype(dw_dtype).itemsize
    if row_tile is None:
        TH = _choose_row_tile(H, W, Ho, Wo, cp, hidp, coutp, s, dw_bytes, vmem_limit)
    else:
        TH = max(1, min(int(row_tile), Ho))
    T = pl.cdiv(Ho, TH)
    n_halo = 3 - s

    # Input: one bf16 pad pass (no f32 round trip): +1 top / +1(+extra) bottom zero rows
    # for the 3x3 halo, channels zero-padded to a lane multiple.
    pad_rows_needed = T * TH * s + 3 - s
    extra_bot = max(0, pad_rows_needed - (H + 2))
    xp = jnp.pad(x.astype(jnp.bfloat16),
                 ((0, 0), (1, 1 + extra_bot), (0, 0), (0, cp - cin)))

    # Weights: fold BN scales into the convs (pure preprocessing, zero runtime cost).
    f32 = jnp.float32
    w1p = jnp.pad(w1.astype(f32) * s1.astype(f32)[None, :],
                  ((0, cp - cin), (0, hidp - hid))).astype(jnp.bfloat16)
    wdwp = jnp.pad(wdw.astype(f32) * s2.astype(f32)[None, :],
                   ((0, 0), (0, hidp - hid))).astype(dw_dtype)
    w3p = jnp.pad(w3.astype(f32) * s3.astype(f32)[None, :],
                  ((0, hidp - hid), (0, coutp - cout))).astype(jnp.bfloat16)
    pad_vec = lambda v, c: jnp.pad(v.astype(f32), (0, c - v.shape[0])).reshape(1, c)
    b1p, b2p, b3p = pad_vec(b1, hidp), pad_vec(b2, hidp), pad_vec(b3, coutp)
    # NOTE: padded output lanes stay exactly zero (w3/b3 pads are zero and the
    # residual's padded lanes are zero), so the padded layout is safe to chain.

    kernel = _make_kernel(H=H, W=W, TH=TH, stride=s, cp=cp, hidp=hidp, coutp=coutp,
                          has_expand=has_expand, use_res=use_res, dw_dtype=dw_dtype)

    const = lambda shape: pl.BlockSpec(shape, lambda n, t: (0,) * len(shape))
    in_specs = [pl.BlockSpec((1, TH * s, W, cp), lambda n, t: (n, t, 0, 0))]
    in_specs += [pl.BlockSpec((1, 1, W, cp),
                              lambda n, t, j=j: (n, (t + 1) * TH * s + j, 0, 0))
                 for j in range(n_halo)]
    args = [xp] * (1 + n_halo)
    if has_expand:
        in_specs += [const((cp, hidp)), const((1, hidp))]
        args += [w1p, b1p]
    in_specs += [const((9, hidp)), const((1, hidp)),
                 const((hidp, coutp)), const((1, coutp))]
    args += [wdwp, b2p, w3p, b3p]

    out = pl.pallas_call(
        kernel,
        out_shape=jax.ShapeDtypeStruct((N, T * TH, Wo, coutp), out_dtype),
        grid_spec=pltpu.PrefetchScalarGridSpec(
            num_scalar_prefetch=0,
            grid=(N, T),
            in_specs=in_specs,
            out_specs=pl.BlockSpec((1, TH, Wo, coutp), lambda n, t: (n, t, 0, 0)),
        ),
        compiler_params=pltpu.CompilerParams(
            dimension_semantics=("parallel", "parallel"),
            vmem_limit_bytes=vmem_limit),
    )(*args)

    if T * TH != Ho:                 # ragged last row tile: drop the padded rows
        out = out[:, :Ho]
    if trim_output and coutp != cout:
        out = out[..., :cout]
    return out


def inverted_residual_pallas(x_nchw, *args, **kwargs):
    """PyTorch-layout (NCHW) wrapper.  Prefer the NHWC entry point: these transposes
    are full HBM round trips that can rival the kernel's own traffic."""
    x = jnp.transpose(x_nchw, (0, 2, 3, 1))
    out = inverted_residual_pallas_nhwc(x, *args, **kwargs)
    return jnp.transpose(out, (0, 3, 1, 2))


# ------------------------- pure-JAX reference (for check) -------------------
def inverted_residual_ref_nhwc(x, w1, s1, b1, wdw, s2, b2, w3, s3, b3,
                               *, stride, expand_ratio):
    x = x.astype(jnp.float32)
    cin = x.shape[-1]
    hid, cout = w3.shape
    if expand_ratio != 1:
        h = jnp.clip(jnp.einsum('nhwc,cd->nhwd', x, w1) * s1 + b1, 0.0, 6.0)
    else:
        h = x
    dw = wdw.reshape(3, 3, 1, hid)                           # HWIO, grouped
    d = lax.conv_general_dilated(
        h, dw, window_strides=(stride, stride), padding=((1, 1), (1, 1)),
        dimension_numbers=('NHWC', 'HWIO', 'NHWC'), feature_group_count=hid)
    d = jnp.clip(d * s2 + b2, 0.0, 6.0)
    p = jnp.einsum('nhwc,cd->nhwd', d, w3) * s3 + b3
    if stride == 1 and cin == cout:
        p = p + x
    return p


def fold_bn(gamma, beta, mean, var, eps=1e-5):
    scale = gamma / jnp.sqrt(var + eps)
    bias = beta - mean * scale
    return scale, bias


if __name__ == "__main__":
    key = jax.random.PRNGKey(0)

    def make_params(pkey, inp, oup, expand_ratio):
        hid = int(round(inp * expand_ratio))
        ks = jax.random.split(pkey, 6)
        # PyTorch-layout conv weights, then converted to kernel layout.
        w1_t = jax.random.normal(ks[0], (hid, inp, 1, 1), jnp.float32) * 0.1
        wdw_t = jax.random.normal(ks[1], (hid, 1, 3, 3), jnp.float32) * 0.1
        w3_t = jax.random.normal(ks[2], (oup, hid, 1, 1), jnp.float32) * 0.1

        def bn(k, c):
            k1, k2, k3, k4 = jax.random.split(k, 4)
            gamma = jax.random.uniform(k1, (c,), minval=0.5, maxval=1.5)
            beta = jax.random.normal(k2, (c,)) * 0.1
            mean = jax.random.normal(k3, (c,)) * 0.1
            var = jax.random.uniform(k4, (c,), minval=0.5, maxval=1.5)
            return fold_bn(gamma, beta, mean, var)

        s1, b1 = bn(ks[3], hid)
        s2, b2 = bn(ks[4], hid)
        s3, b3 = bn(ks[5], oup)
        w1 = jnp.transpose(w1_t[:, :, 0, 0], (1, 0))                   # (inp, hid)
        wdw = jnp.transpose(wdw_t[:, 0, :, :], (1, 2, 0)).reshape(9, hid)
        w3 = jnp.transpose(w3_t[:, :, 0, 0], (1, 0))                   # (hid, oup)
        return (w1, s1, b1, wdw, s2, b2, w3, s3, b3)

    N = 2
    configs = [
        # (inp, oup, H, W, stride, expand_ratio, row_tile)
        (4, 4, 16, 16, 1, 6, 4),     # expand + residual, 4 row tiles (2-row halo path)
        (4, 8, 16, 16, 2, 4, 4),     # expand, stride 2, 2 row tiles (1-row halo path)
        (8, 8, 16, 16, 1, 1, None),  # no expand (expand_ratio=1) + residual, auto tile
        (4, 4, 16, 16, 1, 6, 6),     # ragged tiling: Ho=16, TH=6 -> 3 tiles, partial last
    ]
    for inp, oup, H, W, stride, er, rt in configs:
        key, pkey, xkey = jax.random.split(key, 3)
        params = make_params(pkey, inp, oup, er)
        x = jax.random.normal(xkey, (N, H, W, inp), jnp.float32)

        out = jax.block_until_ready(
            inverted_residual_pallas_nhwc(x, *params, stride=stride,
                                          expand_ratio=er, row_tile=rt))
        ref = inverted_residual_ref_nhwc(x, *params, stride=stride,
                                         expand_ratio=er)
        np.testing.assert_allclose(np.asarray(out).astype(np.float32),
                                   np.asarray(ref), rtol=2e-2, atol=2e-2)

    # PyTorch-layout (NCHW) wrapper parity check on the first config.
    inp, oup, H, W, stride, er, rt = configs[0]
    key, pkey, xkey = jax.random.split(key, 3)
    params = make_params(pkey, inp, oup, er)
    x_nchw = jax.random.normal(xkey, (N, inp, H, W), jnp.float32)
    out_nchw = jax.block_until_ready(
        inverted_residual_pallas(x_nchw, *params, stride=stride,
                                 expand_ratio=er, row_tile=rt))
    ref_nchw = jnp.transpose(
        inverted_residual_ref_nhwc(jnp.transpose(x_nchw, (0, 2, 3, 1)), *params,
                                   stride=stride, expand_ratio=er),
        (0, 3, 1, 2))
    np.testing.assert_allclose(np.asarray(out_nchw).astype(np.float32),
                               np.asarray(ref_nchw), rtol=2e-2, atol=2e-2)

    print("KERNEL_OK")
</pallas_src>

<mosaic_0001>
module attributes {stable_mosaic.version = 11 : i64} {
  func.func @kernel(%arg0: i32, %arg1: i32, %arg2: memref<1x4x16x128xbf16, #tpu.memory_space<vmem>>, %arg3: memref<1x1x16x128xbf16, #tpu.memory_space<vmem>>, %arg4: memref<1x1x16x128xbf16, #tpu.memory_space<vmem>>, %arg5: memref<128x128xbf16, #tpu.memory_space<vmem>>, %arg6: memref<1x128xf32, #tpu.memory_space<vmem>>, %arg7: memref<9x128xf32, #tpu.memory_space<vmem>>, %arg8: memref<1x128xf32, #tpu.memory_space<vmem>>, %arg9: memref<128x128xbf16, #tpu.memory_space<vmem>>, %arg10: memref<1x128xf32, #tpu.memory_space<vmem>>, %arg11: memref<1x4x16x128xbf16, #tpu.memory_space<vmem>>) attributes {dimension_semantics = [#tpu.dimension_semantics<parallel>, #tpu.dimension_semantics<parallel>], iteration_bounds = array<i64: 2, 4>, scalar_prefetch = 0 : i64, scratch_operands = 0 : i64, tpu.core_type = #tpu.core_type<tc>, window_params = [{transform_indices = @transform_0, window_bounds = array<i64: 1, 4, 16, 128>}, {transform_indices = @transform_1, window_bounds = array<i64: 1, 1, 16, 128>}, {transform_indices = @transform_2, window_bounds = array<i64: 1, 1, 16, 128>}, {pipeline_mode = #tpu.pipeline_mode<synchronous>, transform_indices = @transform_3, window_bounds = array<i64: 128, 128>}, {pipeline_mode = #tpu.pipeline_mode<synchronous>, transform_indices = @transform_4, window_bounds = array<i64: 1, 128>}, {pipeline_mode = #tpu.pipeline_mode<synchronous>, transform_indices = @transform_5, window_bounds = array<i64: 9, 128>}, {pipeline_mode = #tpu.pipeline_mode<synchronous>, transform_indices = @transform_6, window_bounds = array<i64: 1, 128>}, {pipeline_mode = #tpu.pipeline_mode<synchronous>, transform_indices = @transform_7, window_bounds = array<i64: 128, 128>}, {pipeline_mode = #tpu.pipeline_mode<synchronous>, transform_indices = @transform_8, window_bounds = array<i64: 1, 128>}, {transform_indices = @transform_9, window_bounds = array<i64: 1, 4, 16, 128>}]} {
    %c0 = arith.constant 0 : index
    %c0_0 = arith.constant 0 : index
    %c0_1 = arith.constant 0 : index
    %c0_2 = arith.constant 0 : index
    %0 = vector.load %arg2[%c0, %c0_0, %c0_1, %c0_2] : memref<1x4x16x128xbf16, #tpu.memory_space<vmem>>, vector<1x4x16x128xbf16>
    %1 = vector.shape_cast %0 : vector<1x4x16x128xbf16> to vector<4x16x128xbf16>
    %c0_3 = arith.constant 0 : index
    %c0_4 = arith.constant 0 : index
    %c0_5 = arith.constant 0 : index
    %c0_6 = arith.constant 0 : index
    %2 = vector.load %arg3[%c0_3, %c0_4, %c0_5, %c0_6] : memref<1x1x16x128xbf16, #tpu.memory_space<vmem>>, vector<1x1x16x128xbf16>
    %3 = vector.shape_cast %2 : vector<1x1x16x128xbf16> to vector<1x16x128xbf16>
    %c0_7 = arith.constant 0 : index
    %c0_8 = arith.constant 0 : index
    %c0_9 = arith.constant 0 : index
    %c0_10 = arith.constant 0 : index
    %4 = vector.load %arg4[%c0_7, %c0_8, %c0_9, %c0_10] : memref<1x1x16x128xbf16, #tpu.memory_space<vmem>>, vector<1x1x16x128xbf16>
    %5 = vector.shape_cast %4 : vector<1x1x16x128xbf16> to vector<1x16x128xbf16>
    %6 = tpu.concatenate %1, %3, %5 in 0 : vector<4x16x128xbf16>, vector<1x16x128xbf16>, vector<1x16x128xbf16> -> vector<6x16x128xbf16>
    %7 = vector.shape_cast %6 : vector<6x16x128xbf16> to vector<96x128xbf16>
    %c0_11 = arith.constant 0 : index
    %c0_12 = arith.constant 0 : index
    %8 = vector.load %arg5[%c0_11, %c0_12] : memref<128x128xbf16, #tpu.memory_space<vmem>>, vector<128x128xbf16>
    %cst = arith.constant dense<0.000000e+00> : vector<96x128xf32>
    %9 = tpu.matmul %7, %8, %cst {dimension_numbers = #tpu.dot_dimension_numbers<[1], [0], [0], [1], [0, 0, 1, 1], [], []>} : vector<96x128xbf16>, vector<128x128xbf16>, vector<96x128xf32> -> vector<96x128xf32>
    %c0_13 = arith.constant 0 : index
    %c0_14 = arith.constant 0 : index
    %10 = vector.load %arg6[%c0_13, %c0_14] : memref<1x128xf32, #tpu.memory_space<vmem>>, vector<1x128xf32>
    %11 = vector.broadcast %10 : vector<1x128xf32> to vector<96x128xf32>
    %12 = arith.addf %9, %11 : vector<96x128xf32>
    %cst_15 = arith.constant 0.000000e+00 : f32
    %cst_16 = arith.constant 6.000000e+00 : f32
    %13 = vector.broadcast %cst_15 : f32 to vector<96x128xf32>
    %14 = arith.maximumf %13, %12 : vector<96x128xf32>
    %15 = vector.broadcast %cst_16 : f32 to vector<96x128xf32>
    %16 = arith.minimumf %15, %14 : vector<96x128xf32>
    %17 = vector.shape_cast %16 : vector<96x128xf32> to vector<6x16x128xf32>
    %c4_i32 = arith.constant 4 : i32
    %18 = arith.muli %arg1, %c4_i32 : i32
    %19 = tpu.iota {dimensions = array<i32: 0>} : vector<6x16x128xi32>
    %20 = vector.broadcast %18 : i32 to vector<6x16x128xi32>
    %21 = arith.addi %20, %19 : vector<6x16x128xi32>
    %c1_i32 = arith.constant 1 : i32
    %22 = vector.broadcast %c1_i32 : i32 to vector<6x16x128xi32>
    %23 = arith.cmpi sge, %21, %22 : vector<6x16x128xi32>
    %c16_i32 = arith.constant 16 : i32
    %24 = vector.broadcast %c16_i32 : i32 to vector<6x16x128xi32>
    %25 = arith.cmpi sle, %21, %24 : vector<6x16x128xi32>
    %26 = arith.andi %23, %25 : vector<6x16x128xi1>
    %cst_17 = arith.constant 0.000000e+00 : f32
    %27 = vector.broadcast %cst_17 : f32 to vector<6x16x128xf32>
    %28 = arith.select %26, %17, %27 : vector<6x16x128xi1>, vector<6x16x128xf32>
    %c0_18 = arith.constant 0 : index
    %c0_19 = arith.constant 0 : index
    %29 = vector.load %arg7[%c0_18, %c0_19] : memref<9x128xf32, #tpu.memory_space<vmem>>, vector<9x128xf32>
    %30 = tpu.iota {dimensions = array<i32: 1>} : vector<1x16x128xi32>
    %c0_i32 = arith.constant 0 : i32
    %31 = vector.broadcast %c0_i32 : i32 to vector<1x16x128xi32>
    %32 = arith.cmpi sgt, %30, %31 : vector<1x16x128xi32>
    %33 = arith.extui %32 : vector<1x16x128xi1> to vector<1x16x128xi32>
    %34 = arith.sitofp %33 : vector<1x16x128xi32> to vector<1x16x128xf32>
    %c15_i32 = arith.constant 15 : i32
    %35 = vector.broadcast %c15_i32 : i32 to vector<1x16x128xi32>
    %36 = arith.cmpi slt, %30, %35 : vector<1x16x128xi32>
    %37 = arith.extui %36 : vector<1x16x128xi1> to vector<1x16x128xi32>
    %38 = arith.sitofp %37 : vector<1x16x128xi32> to vector<1x16x128xf32>
    %cst_20 = arith.constant 0.000000e+00 : f32
    %39 = vector.broadcast %cst_20 : f32 to vector<4x16x128xf32>
    %c1_i32_21 = arith.constant 1 : i32
    %40 = tpu.dynamic_rotate %28 by %c1_i32_21 dim 1 : vector<6x16x128xf32>, i32 -> vector<6x16x128xf32>
    %41 = vector.broadcast %34 : vector<1x16x128xf32> to vector<6x16x128xf32>
    %42 = arith.mulf %40, %41 : vector<6x16x128xf32>
    %43 = vector.extract_strided_slice %29 {offsets = [0, 0], sizes = [1, 128], strides = [1, 1]} : vector<9x128xf32> to vector<1x128xf32>
    %44 = vector.extract_strided_slice %42 {offsets = [0, 0, 0], sizes = [4, 16, 128], strides = [1, 1, 1]} : vector<6x16x128xf32> to vector<4x16x128xf32>
    %45 = vector.shape_cast %43 : vector<1x128xf32> to vector<1x1x128xf32>
    %46 = vector.broadcast %45 : vector<1x1x128xf32> to vector<4x16x128xf32>
    %47 = arith.mulf %44, %46 : vector<4x16x128xf32>
    %48 = arith.addf %39, %47 : vector<4x16x128xf32>
    %49 = vector.extract_strided_slice %29 {offsets = [3, 0], sizes = [1, 128], strides = [1, 1]} : vector<9x128xf32> to vector<1x128xf32>
    %50 = vector.extract_strided_slice %42 {offsets = [1, 0, 0], sizes = [4, 16, 128], strides = [1, 1, 1]} : vector<6x16x128xf32> to vector<4x16x128xf32>
    %51 = vector.shape_cast %49 : vector<1x128xf32> to vector<1x1x128xf32>
    %52 = vector.broadcast %51 : vector<1x1x128xf32> to vector<4x16x128xf32>
    %53 = arith.mulf %50, %52 : vector<4x16x128xf32>
    %54 = arith.addf %48, %53 : vector<4x16x128xf32>
    %55 = vector.extract_strided_slice %29 {offsets = [6, 0], sizes = [1, 128], strides = [1, 1]} : vector<9x128xf32> to vector<1x128xf32>
    %56 = vector.extract_strided_slice %42 {offsets = [2, 0, 0], sizes = [4, 16, 128], strides = [1, 1, 1]} : vector<6x16x128xf32> to vector<4x16x128xf32>
    %57 = vector.shape_cast %55 : vector<1x128xf32> to vector<1x1x128xf32>
    %58 = vector.broadcast %57 : vector<1x1x128xf32> to vector<4x16x128xf32>
    %59 = arith.mulf %56, %58 : vector<4x16x128xf32>
    %60 = arith.addf %54, %59 : vector<4x16x128xf32>
    %61 = vector.extract_strided_slice %29 {offsets = [1, 0], sizes = [1, 128], strides = [1, 1]} : vector<9x128xf32> to vector<1x128xf32>
    %62 = vector.extract_strided_slice %28 {offsets = [0, 0, 0], sizes = [4, 16, 128], strides = [1, 1, 1]} : vector<6x16x128xf32> to vector<4x16x128xf32>
    %63 = vector.shape_cast %61 : vector<1x128xf32> to vector<1x1x128xf32>
    %64 = vector.broadcast %63 : vector<1x1x128xf32> to vector<4x16x128xf32>
    %65 = arith.mulf %62, %64 : vector<4x16x128xf32>
    %66 = arith.addf %60, %65 : vector<4x16x128xf32>
    %67 = vector.extract_strided_slice %29 {offsets = [4, 0], sizes = [1, 128], strides = [1, 1]} : vector<9x128xf32> to vector<1x128xf32>
    %68 = vector.extract_strided_slice %28 {offsets = [1, 0, 0], sizes = [4, 16, 128], strides = [1, 1, 1]} : vector<6x16x128xf32> to vector<4x16x128xf32>
    %69 = vector.shape_cast %67 : vector<1x128xf32> to vector<1x1x128xf32>
    %70 = vector.broadcast %69 : vector<1x1x128xf32> to vector<4x16x128xf32>
    %71 = arith.mulf %68, %70 : vector<4x16x128xf32>
    %72 = arith.addf %66, %71 : vector<4x16x128xf32>
    %73 = vector.extract_strided_slice %29 {offsets = [7, 0], sizes = [1, 128], strides = [1, 1]} : vector<9x128xf32> to vector<1x128xf32>
    %74 = vector.extract_strided_slice %28 {offsets = [2, 0, 0], sizes = [4, 16, 128], strides = [1, 1, 1]} : vector<6x16x128xf32> to vector<4x16x128xf32>
    %75 = vector.shape_cast %73 : vector<1x128xf32> to vector<1x1x128xf32>
    %76 = vector.broadcast %75 : vector<1x1x128xf32> to vector<4x16x128xf32>
    %77 = arith.mulf %74, %76 : vector<4x16x128xf32>
    %78 = arith.addf %72, %77 : vector<4x16x128xf32>
    %c15_i32_22 = arith.constant 15 : i32
    %79 = tpu.dynamic_rotate %28 by %c15_i32_22 dim 1 : vector<6x16x128xf32>, i32 -> vector<6x16x128xf32>
    %80 = vector.broadcast %38 : vector<1x16x128xf32> to vector<6x16x128xf32>
    %81 = arith.mulf %79, %80 : vector<6x16x128xf32>
    %82 = vector.extract_strided_slice %29 {offsets = [2, 0], sizes = [1, 128], strides = [1, 1]} : vector<9x128xf32> to vector<1x128xf32>
    %83 = vector.extract_strided_slice %81 {offsets = [0, 0, 0], sizes = [4, 16, 128], strides = [1, 1, 1]} : vector<6x16x128xf32> to vector<4x16x128xf32>
    %84 = vector.shape_cast %82 : vector<1x128xf32> to vector<1x1x128xf32>
    %85 = vector.broadcast %84 : vector<1x1x128xf32> to vector<4x16x128xf32>
    %86 = arith.mulf %83, %85 : vector<4x16x128xf32>
    %87 = arith.addf %78, %86 : vector<4x16x128xf32>
    %88 = vector.extract_strided_slice %29 {offsets = [5, 0], sizes = [1, 128], strides = [1, 1]} : vector<9x128xf32> to vector<1x128xf32>
    %89 = vector.extract_strided_slice %81 {offsets = [1, 0, 0], sizes = [4, 16, 128], strides = [1, 1, 1]} : vector<6x16x128xf32> to vector<4x16x128xf32>
    %90 = vector.shape_cast %88 : vector<1x128xf32> to vector<1x1x128xf32>
    %91 = vector.broadcast %90 : vector<1x1x128xf32> to vector<4x16x128xf32>
    %92 = arith.mulf %89, %91 : vector<4x16x128xf32>
    %93 = arith.addf %87, %92 : vector<4x16x128xf32>
    %94 = vector.extract_strided_slice %29 {offsets = [8, 0], sizes = [1, 128], strides = [1, 1]} : vector<9x128xf32> to vector<1x128xf32>
    %95 = vector.extract_strided_slice %81 {offsets = [2, 0, 0], sizes = [4, 16, 128], strides = [1, 1, 1]} : vector<6x16x128xf32> to vector<4x16x128xf32>
    %96 = vector.shape_cast %94 : vector<1x128xf32> to vector<1x1x128xf32>
    %97 = vector.broadcast %96 : vector<1x1x128xf32> to vector<4x16x128xf32>
    %98 = arith.mulf %95, %97 : vector<4x16x128xf32>
    %99 = arith.addf %93, %98 : vector<4x16x128xf32>
    %c0_23 = arith.constant 0 : index
    %c0_24 = arith.constant 0 : index
    %100 = vector.load %arg8[%c0_23, %c0_24] : memref<1x128xf32, #tpu.memory_space<vmem>>, vector<1x128xf32>
    %101 = vector.shape_cast %100 : vector<1x128xf32> to vector<1x1x128xf32>
    %102 = vector.broadcast %101 : vector<1x1x128xf32> to vector<4x16x128xf32>
    %103 = arith.addf %99, %102 : vector<4x16x128xf32>
    %cst_25 = arith.constant 0.000000e+00 : f32
    %cst_26 = arith.constant 6.000000e+00 : f32
    %104 = vector.broadcast %cst_25 : f32 to vector<4x16x128xf32>
    %105 = arith.maximumf %104, %103 : vector<4x16x128xf32>
    %106 = vector.broadcast %cst_26 : f32 to vector<4x16x128xf32>
    %107 = arith.minimumf %106, %105 : vector<4x16x128xf32>
    %108 = vector.shape_cast %107 : vector<4x16x128xf32> to vector<64x128xf32>
    %109 = arith.truncf %108 : vector<64x128xf32> to vector<64x128xbf16>
    %c0_27 = arith.constant 0 : index
    %c0_28 = arith.constant 0 : index
    %110 = vector.load %arg9[%c0_27, %c0_28] : memref<128x128xbf16, #tpu.memory_space<vmem>>, vector<128x128xbf16>
    %cst_29 = arith.constant dense<0.000000e+00> : vector<64x128xf32>
    %111 = tpu.matmul %109, %110, %cst_29 {dimension_numbers = #tpu.dot_dimension_numbers<[1], [0], [0], [1], [0, 0, 1, 1], [], []>} : vector<64x128xbf16>, vector<128x128xbf16>, vector<64x128xf32> -> vector<64x128xf32>
    %c0_30 = arith.constant 0 : index
    %c0_31 = arith.constant 0 : index
    %112 = vector.load %arg10[%c0_30, %c0_31] : memref<1x128xf32, #tpu.memory_space<vmem>>, vector<1x128xf32>
    %113 = vector.broadcast %112 : vector<1x128xf32> to vector<64x128xf32>
    %114 = arith.addf %111, %113 : vector<64x128xf32>
    %115 = vector.shape_cast %114 : vector<64x128xf32> to vector<4x16x128xf32>
    %116 = vector.extract_strided_slice %6 {offsets = [1, 0, 0], sizes = [4, 16, 128], strides = [1, 1, 1]} : vector<6x16x128xbf16> to vector<4x16x128xbf16>
    %117 = arith.extf %116 : vector<4x16x128xbf16> to vector<4x16x128xf32>
    %118 = arith.addf %115, %117 : vector<4x16x128xf32>
    %119 = arith.truncf %118 : vector<4x16x128xf32> to vector<4x16x128xbf16>
    %c0_32 = arith.constant 0 : index
    %c0_33 = arith.constant 0 : index
    %c0_34 = arith.constant 0 : index
    %c0_35 = arith.constant 0 : index
    %120 = vector.load %arg11[%c0_32, %c0_33, %c0_34, %c0_35] : memref<1x4x16x128xbf16, #tpu.memory_space<vmem>>, vector<1x4x16x128xbf16>
    %121 = vector.shape_cast %120 : vector<1x4x16x128xbf16> to vector<4x16x128xbf16>
    %122 = vector.shape_cast %119 : vector<4x16x128xbf16> to vector<1x4x16x128xbf16>
    tpu.vector_store %arg11[%c0_32, %c0_33, %c0_34, %c0_35], %122 {strides = array<i32>} : memref<1x4x16x128xbf16, #tpu.memory_space<vmem>>, vector<1x4x16x128xbf16>,
    return
  }
  func.func @transform_0(%arg0: i32, %arg1: i32) -> (i32, i32, i32, i32) {
    %c0_i32 = arith.constant 0 : i32
    %c0_i32_0 = arith.constant 0 : i32
    %c0_i32_1 = arith.constant 0 : i32
    return %arg0, %arg1, %c0_i32, %c0_i32_0 : i32, i32, i32, i32
  }
  func.func @transform_1(%arg0: i32, %arg1: i32) -> (i32, i32, i32, i32) {
    %c1_i32 = arith.constant 1 : i32
    %0 = arith.addi %arg1, %c1_i32 : i32
    %c4_i32 = arith.constant 4 : i32
    %1 = arith.muli %0, %c4_i32 : i32
    %c1_i32_0 = arith.constant 1 : i32
    %2 = arith.muli %1, %c1_i32_0 : i32
    %c0_i32 = arith.constant 0 : i32
    %3 = arith.addi %2, %c0_i32 : i32
    %c0_i32_1 = arith.constant 0 : i32
    %c0_i32_2 = arith.constant 0 : i32
    %c0_i32_3 = arith.constant 0 : i32
    return %arg0, %3, %c0_i32_1, %c0_i32_2 : i32, i32, i32, i32
  }
  func.func @transform_2(%arg0: i32, %arg1: i32) -> (i32, i32, i32, i32) {
    %c1_i32 = arith.constant 1 : i32
    %0 = arith.addi %arg1, %c1_i32 : i32
    %c4_i32 = arith.constant 4 : i32
    %1 = arith.muli %0, %c4_i32 : i32
    %c1_i32_0 = arith.constant 1 : i32
    %2 = arith.muli %1, %c1_i32_0 : i32
    %c1_i32_1 = arith.constant 1 : i32
    %3 = arith.addi %2, %c1_i32_1 : i32
    %c0_i32 = arith.constant 0 : i32
    %c0_i32_2 = arith.constant 0 : i32
    %c0_i32_3 = arith.constant 0 : i32
    return %arg0, %3, %c0_i32, %c0_i32_2 : i32, i32, i32, i32
  }
  func.func @transform_3(%arg0: i32, %arg1: i32) -> (i32, i32) {
    %c0_i32 = arith.constant 0 : i32
    %c0_i32_0 = arith.constant 0 : i32
    %c0_i32_1 = arith.constant 0 : i32
    return %c0_i32, %c0_i32_0 : i32, i32
  }
  func.func @transform_4(%arg0: i32, %arg1: i32) -> (i32, i32) {
    %c0_i32 = arith.constant 0 : i32
    %c0_i32_0 = arith.constant 0 : i32
    %c0_i32_1 = arith.constant 0 : i32
    return %c0_i32, %c0_i32_0 : i32, i32
  }
  func.func @transform_5(%arg0: i32, %arg1: i32) -> (i32, i32) {
    %c0_i32 = arith.constant 0 : i32
    %c0_i32_0 = arith.constant 0 : i32
    %c0_i32_1 = arith.constant 0 : i32
    return %c0_i32, %c0_i32_0 : i32, i32
  }
  func.func @transform_6(%arg0: i32, %arg1: i32) -> (i32, i32) {
    %c0_i32 = arith.constant 0 : i32
    %c0_i32_0 = arith.constant 0 : i32
    %c0_i32_1 = arith.constant 0 : i32
    return %c0_i32, %c0_i32_0 : i32, i32
  }
  func.func @transform_7(%arg0: i32, %arg1: i32) -> (i32, i32) {
    %c0_i32 = arith.constant 0 : i32
    %c0_i32_0 = arith.constant 0 : i32
    %c0_i32_1 = arith.constant 0 : i32
    return %c0_i32, %c0_i32_0 : i32, i32
  }
  func.func @transform_8(%arg0: i32, %arg1: i32) -> (i32, i32) {
    %c0_i32 = arith.constant 0 : i32
    %c0_i32_0 = arith.constant 0 : i32
    %c0_i32_1 = arith.constant 0 : i32
    return %c0_i32, %c0_i32_0 : i32, i32
  }
  func.func @transform_9(%arg0: i32, %arg1: i32) -> (i32, i32, i32, i32) {
    %c0_i32 = arith.constant 0 : i32
    %c0_i32_0 = arith.constant 0 : i32
    %c0_i32_1 = arith.constant 0 : i32
    return %arg0, %arg1, %c0_i32, %c0_i32_0 : i32, i32, i32, i32
  }
}

</mosaic_0001>

<bundles_post_ra>
// kernel: tpu_custom_call.1
= control target key start
LH: loop header
LB: loop body
LE: loop exit
PB: predicated region body
PF: predicated region fallthrough
CT: control target
= control target key end

     0   :  { %s2954_s0 = inlined_call_operand.hbm [shape: bf16[2,18,16,128], index: 0, kind: input, shape index: {}]   ;;  %s2955_s1 = inlined_call_operand.hbm [shape: bf16[2,18,16,128], index: 1, kind: input, shape index: {}]   ;;  %s2956_s2 = inlined_call_operand.hbm [shape: bf16[2,18,16,128], index: 2, kind: input, shape index: {}]   ;;  %s2957_s3 = inlined_call_operand.hbm [shape: bf16[128,128], index: 3, kind: input, shape index: {}]   ;;  %s2958_s4 = inlined_call_operand.vmem [shape: f32[1,128], index: 4, kind: input, shape index: {}]   ;;  %s2959_s5 = inlined_call_operand.hbm [shape: f32[9,128], index: 5, kind: input, shape index: {}]   ;;  %s2960_s6 = inlined_call_operand.vmem [shape: f32[1,128], index: 6, kind: input, shape index: {}]   ;;  %s2961_s7 = inlined_call_operand.hbm [shape: bf16[128,128], index: 7, kind: input, shape index: {}]   ;;  %s2962_s8 = inlined_call_operand.vmem [shape: f32[1,128], index: 8, kind: input, shape index: {}]   ;;  %s2963_s9 = inlined_call_operand.hbm [shape: bf16[2,16,16,128], index: 9, kind: output, shape index: {}]  }
   0x1   :  { %2987 = sst [smem:[#allocation39_spill]] %s2954_s0 }
   0x2   :  { %2988 = sst [smem:[#allocation40_spill]] %s2955_s1 }
   0x3   :  { %2989 = sst [smem:[#allocation41_spill]] %s2956_s2 }
   0x4   :  { %2990 = sst [smem:[#allocation42_spill]] %s2957_s3 }
   0x5   :  { %2991 = sst [smem:[#allocation43_spill]] %s2958_s4 }
   0x6   :  { %2992 = sst [smem:[#allocation44_spill]] %s2959_s5 }
   0x7   :  { %2993 = sst [smem:[#allocation45_spill]] %s2960_s6 }
   0x8   :  { %2994 = sst [smem:[#allocation46_spill]] %s2961_s7 }
   0x9   :  { %2995 = sst [smem:[#allocation47_spill]] %s2962_s8 }
   0xa   :  { %2996 = sst [smem:[#allocation48_spill]] %s2963_s9 }
   0xb   :  { %14 = vsyncpa [#allocation3], 0 }
   0xc   :  { %16 = vsyncpa [#allocation3 + $0x1], 0 }
   0xd   :  { %17 = vsyncpa [#allocation6], 0 }
   0xe   :  { %19 = vsyncpa [#allocation6 + $0x1], 0 }
   0xf   :  { %20 = vsyncpa [#allocation9], 0 }
  0x10   :  { %21 = vsyncpa [#allocation12], 0 }
  0x11   :  { %22 = vsyncpa [#allocation4], 0 }
  0x12   :  { %24 = vsyncpa [#allocation4 + $0x1], 0  ;;  %s2154_s30 = smov 0   ;;  %s2156_s10 = smov 0  }
  0x13   :  { %s2158_s11 = smov 0   ;;  %s2160_s12 = smov 0  }
  0x14   :  { %s2162_s13 = smov 0   ;;  %s2164_s14 = smov 0  }
  0x15   :  { %s2166_s15 = smov 0   ;;  %s2168_s16 = smov 0  }
  0x16   :  { %s2170_s17 = smov 0   ;;  %s2172_s18 = smov 0  }
  0x17   :  { %s2174_s19 = smov 0   ;;  %s2176_s20 = smov 0  }
  0x18   :  { %s2178_s21 = smov 0   ;;  %s2180_s22 = smov 0  }
  0x19 LB: > { %2997 = sst [smem:[#allocation20_spill]] %s2039_s10  ;;  %s2225_s23 = sadd.s32 4294967295, %s2087_s22   ;;  %s2087_s22 = sphi %s2180_s22, %s30_s22   ;;  %s2083_s21 = sphi %s2178_s21, %s3086_s21   ;;  %s2079_s20 = sphi %s2176_s20, %s3075_s20   ;;  %s2075_s19 = sphi %s2174_s19, %s3074_s19   ;;  %s2071_s18 = sphi %s2172_s18, %s3085_s18   ;;  %s2067_s17 = sphi %s2170_s17, %s3084_s17   ;;  %s2063_s16 = sphi %s2168_s16, %s3083_s16   ;;  %s2059_s15 = sphi %s2166_s15, %s3082_s15   ;;  %s2055_s14 = sphi %s2164_s14, %s3070_s14   ;;  %s2051_s13 = sphi %s2162_s13, %s3081_s13   ;;  %s2047_s12 = sphi %s2160_s12, %s3080_s12   ;;  %s2043_s11 = sphi %s2158_s11, %s3079_s11   ;;  %s2039_s10 = sphi %s2156_s10, %s3078_s10   ;;  %s2035_s30 = sphi %s2154_s30, %s3067_s30  }
  0x1a   : > { %2998 = sst [smem:[#allocation21_spill]] %s2055_s14  ;;  %s39_s25 = sadd.s32 1, %s2079_s20 }
  0x1b   : > { %2999 = sst [smem:[#allocation22_spill]] %s2059_s15  ;;  %s42_s26 = sadd.s32 1, %s2083_s21 }
  0x1c   : > { %3000 = sst [smem:[#allocation23_spill]] %s2067_s17  ;;  %p40_p0 = scmp.ge.s32.totalorder %s39_s25, 4 }
  0x1d   : > { %3001 = sst [smem:[#allocation24_spill]] %s2071_s18  ;;  %s51_s27 = sadd.s32 1, %s2067_s17 }
  0x1e   : > { %3002 = sst [smem:[#allocation25_spill]] %s2075_s19  ;;  %p58_p1 = scmp.ne.s32.totalorder %s2067_s17, %s2063_s16 }
  0x1f   : > { %3003 = sst [smem:[#allocation26_spill]] %s2079_s20  ;;  %p59_p2 = scmp.eq.s32.totalorder %s2087_s22, 0 }
  0x20   : > { %3004 = sst [smem:[#allocation27_spill]] %s2083_s21  ;;  %s3088_s25 = smov (%p40_p0, %s39_s25), 0 }
  0x21   : > { %3005 = sst [smem:[#allocation28_spill]] %s2087_s22  ;;  %s3090_s26 = smov (!%p40_p0, %s42_s26), %s2083_s21 }
  0x22   : > { %3006 = sst [smem:[#allocation29_spill]] %s3088_s25  ;;  %s47_s28 = ssub.s32 %s2079_s20, %s3088_s25 }
  0x23   : > { %p2244_p3 = por %p59_p2, %p58_p1  ;;  %p44_p4 = scmp.ge.s32.totalorder %s3090_s26, 2 }
  0x24   : > { %p2969_p5 = scmp.ne.s32.totalorder %s2063_s16, %s2059_s15  ;;  %p65_p6 = scmp.eq.s32.totalorder %s2225_s23, 0 }
  0x25   : > { %s1492_s24 = sshll.u32 %s2079_s20, 2  ;;  %s3092_s26 = smov (%p44_p4, %s3090_s26), 0 }
  0x26   : > { %3008 = sst [smem:[#allocation30_spill]] %s3092_s26  ;;  %p2259_p7 = por %p65_p6, %p2969_p5 }
  0x27   : > { %s1493_s19 = sadd.s32 4, %s1492_s24  ;;  %s46_s8 = ssub.s32 %s2083_s21, %s3092_s26 }
  0x28   : > { %s3009_s9 = scalar_select %p2259_p7, 1, 0 }
  0x29   : > { %s1494_s6 = sshll.u32 %s3088_s25, 2  ;;  %s48_s4 = sor.u32 %s47_s28, %s46_s8 }
  0x2a   : > { %s1495_s18 = sadd.s32 4, %s1494_s6  ;;  %p49_p8 = scmp.eq.s32.totalorder %s48_s4, 0 }
  0x2b   : > { %s79_s2 = ssub.s32 %s1493_s19, %s1495_s18  ;;  %s83_s0 = sadd.s32 1, %s2055_s14 }
  0x2c   : > { %s80_s1 = sor.u32 %s79_s2, %s46_s8  ;;  %p90_p10 = scmp.ne.s32.totalorder %s2055_s14, %s2051_s13 }
  0x2d   : > { %s2268_s20 = scalar_select %p49_p8, %s2067_s17, %s51_s27  }
  0x2e   : > { %p81_p9 = scmp.eq.s32.totalorder %s80_s1, 0  ;;  %p96_p11 = scmp.ne.s32.totalorder %s2051_s13, %s2047_s12 }
  0x2f   : > { %3010 = sst [smem:[#allocation31_spill]] %s2268_s20  ;;  %s108_s6 = sadd.s32 1, %s1493_s19 }
  0x30   : > { %s2275_s24 = scalar_select %p81_p9, %s2055_s14, %s83_s0  }
  0x31   : > { %p2279_p12 = por %p90_p10, %p59_p2  ;;  %p2285_p13 = por %p96_p11, %p65_p6 }
  0x32   : > { %3011 = sst [smem:[#allocation32_spill]] %s2275_s24  ;;  %s111_s4 = sadd.s32 1, %s1495_s18 }
  0x33   : > { %s3013_s1 = scalar_select %p2285_p13, 1, 0 }
  0x34   : > { %s117_s12 = sadd.s32 1, %s2043_s11  ;;  %s113_s19 = ssub.s32 %s108_s6, %s111_s4 }
  0x35   : > { %p124_p0 = scmp.ne.s32.totalorder %s2043_s11, %s2039_s10  ;;  %s114_s0 = sor.u32 %s113_s19, %s46_s8 }
  0x36   : > { %p130_p4 = scmp.ne.s32.totalorder %s2039_s10, %s2035_s30  ;;  %p115_p8 = scmp.eq.s32.totalorder %s114_s0, 0 }
  0x37   : > { %p2296_p9 = por %p124_p0, %p59_p2  ;;  %p282_p11 = scmp.eq.s32.totalorder %s2225_s23, 7 }
  0x38   : > { %p2302_p10 = por %p130_p4, %p65_p6  ;;  %s3020_s8 = sadd.s32 4294967294, %s2087_s22  }
  0x39   : > { %s3014_s27 = scalar_select %p2296_p9, 1, 0 }
  0x3a   : > { %s3015_s28 = scalar_select %p2302_p10, 1, 0 }
  0x3b   : > { %s2308_s26 = scalar_select %p115_p8, %s2043_s11, %s117_s12  }
  0x3c   : > { %3016 = sst [smem:[#allocation33_spill]] %s3015_s28  ;;  %p2313_p5 = por %p282_p11, %p58_p1 }
  0x3d   : > { %3017 = sst [smem:[#allocation34_spill]] %s2308_s26  ;;  %p288_p13 = scmp.eq.s32.totalorder %s3020_s8, 7 }
  0x3e   : > { %s3018_s18 = scalar_select %p2313_p5, 1, 0 }
  0x3f   : > { %p1364_p2 = scmp.ge.s32.totalorder %s2087_s22, 1  ;;  %p295_p0 = scmp.lt.s32.totalorder %s2087_s22, 9 }
  0x40   : > { %3019 = sst [smem:[#allocation35_spill]] %s3018_s18  ;;  %p3021_p7 = scmp.ne.s32.totalorder %s2063_s16, %s2059_s15 }
  0x41   : > { %p2328_p4 = pnand %p1364_p2, %p295_p0  ;;  %s3025_s3 = sld [smem:[#allocation42_spill]] }
  0x42   : > { %p2324_p9 = por %p288_p13, %p3021_p7  ;;  %s2089_s0 = smov [#allocation8]  }
  0x43   : > { %p1587_p1 = pneg %p2328_p4  ;;  %s308_s8 = sshll.u32 %s2089_s0, 4  ;;  %s309_s8 = int_to_ptr.vmem [resolvable:$true] %s308_s8 }
  0x44   : > { %s3022_s30 = scalar_select %p2324_p9, 1, 0 }
  0x45   : > { %p2339_p7 = pnand %p1587_p1, %p65_p6  ;;  %s3027_s5 = sld [smem:[#allocation44_spill]] }
  0x46   : > { %3023 = sst [smem:[#allocation36_spill]] %s3022_s30  ;;  %s2090_s4 = smov 64  }
  0x47   : > { %s306_s19 = sshll.u32 %s3025_s3, 4  ;;  %s2091_s12 = smov 4   ;;  %s307_s19 = int_to_ptr.hbm [resolvable:$true] %s306_s19 }
  0x48   : > { %1590 = dma.hbm_to_vmem [thread:$0]  (!%p2339_p7), %s307_s19, 1024, %s309_s8, [#allocation9], %s2090_s4, %s2090_s4, %s2091_s12  }
  0x49   : > { %s2092_s3 = smov [#allocation10]   ;;  %s2093_s30 = smov 128  }
  0x4a   : > { %s325_s0 = sshll.u32 %s2092_s3, 4  ;;  %s2094_s15 = smov 8   ;;  %s326_s0 = int_to_ptr.vmem [resolvable:$true] %s325_s0 }
  0x4b   : > { %s323_s26 = sshll.u32 %s3027_s5, 4  ;;  %s3028_s7 = sld [smem:[#allocation46_spill]]  ;;  %s324_s26 = int_to_ptr.hbm [resolvable:$true] %s323_s26 }
  0x4c   : > { %1593 = dma.hbm_to_vmem [thread:$0]  (!%p2339_p7), %s324_s26, 256, %s326_s0, [#allocation9], %s2093_s30, %s2093_s30, %s2094_s15  }
  0x4d   : > { %s2095_s24 = smov [#allocation11]   ;;  %p1368_p13 = scmp.ge.s32.totalorder %s2087_s22, 8 }
  0x4e   : > { %s342_s5 = sshll.u32 %s2095_s24, 4  ;;  %s343_s5 = int_to_ptr.vmem [resolvable:$true] %s342_s5 }
  0x4f   : > { %355 = sbr.rel (%p1368_p13) target bundleno = 127 (0x7f), region = 40 }
  0x51   : > { %s340_s20 = sshll.u32 %s3028_s7, 4  ;;  %s341_s20 = int_to_ptr.hbm [resolvable:$true] %s340_s20 }
  0x52   : > { %1596 = dma.hbm_to_vmem [thread:$0]  (!%p2339_p7), %s341_s20, 1024, %s343_s5, [#allocation12], %s2090_s4, %s2090_s4, %s2091_s12  }
  0x54   : > { %358 = sbr.rel (!%p2244_p3) target bundleno = 111 (0x6f), region = 44  ;;  %s3029_s3 = sld [smem:[#allocation26_spill]] (%p2244_p3) }
  0x55   : > { %s359_s15 = sand.u32 (%p2244_p3), 1, %s2067_s17   ;;  %s1567_s19 = smul.u32 (%p2244_p3), 36, %s2083_s21 }
  0x56   : > { %s1369_s26 = sshll.u32 (%p2244_p3), %s359_s15, 5  ;;  %s2359_s30 = scalar_lea.sflag (%p2244_p3), [#allocation3], %s359_s15 }
  0x57   : > { %s363_s28 = scalar_lea.vmem (%p2244_p3), [#allocation2], %s1369_s26  ;;  %s3030_s29 = sld [smem:[#allocation39_spill]] (%p2244_p3) }
  0x58   : > { %s2363_s8 = sshll.u32 (%p2244_p3), %s363_s28, 4  ;;  %s384_s8 = int_to_ptr.vmem [resolvable:$true] %s2363_s8 }
  0x5a   : > { %s1501_s18 = sshll.u32 %s3029_s3, 3 }
  0x5b   : > { %s376_s5 = sadd.s32 %s1567_s19, %s1501_s18 }
  0x5c   : > { %s1375_s25 = sshll.u32 %s376_s5, 2 }
  0x5d   : > { %s378_s0 = scalar_lea.hbm %s3030_s29, %s1375_s25  ;;  %s1839_s3 = scalar_lea.hbm %s3030_s29, 288 }
  0x5e   : > { %s381_s20 = sshll.u32 %s378_s0, 4  ;;  %s382_s20 = int_to_ptr.hbm [resolvable:$true] %s381_s20 }
  0x5f   : > { %s1828_s24 = sshra.s32 %s382_s20, 4  ;;  %s1829_s24 = int_to_ptr.hbm [resolvable:$true] %s1828_s24 }
  0x60   : > { %s1835_s7 = scalar_lea.hbm %s1829_s24, 32 }
  0x61   : > { %p1836_p3 = scmp.ne.s32.totalorder %s1829_s24, %s1835_s7  ;;  %p1841_p8 = scmp.lt.s32.totalorder %s1839_s3, %s1835_s7 }
  0x63   : > { %p1843_p11 = pnand %p1841_p8, %p1836_p3 }
  0x65   : > { %1846 = shalt.err (!%p1843_p11)
}
  0x66   : > { %s1847_s28 = sshra.s32 %s384_s8, 4  ;;  %s2096_s19 = smov [#allocation2]   ;;  %s1848_s28 = int_to_ptr.vmem [resolvable:$true] %s1847_s28 }
  0x67   : > { %s1854_s18 = scalar_lea.vmem %s1848_s28, 32  ;;  %s1858_s5 = scalar_lea.vmem %s2096_s19, 64 }
  0x68   : > { %p1855_p2 = scmp.ne.s32.totalorder %s1848_s28, %s1854_s18  ;;  %p1860_p0 = scmp.lt.s32.totalorder %s1858_s5, %s1854_s18 }
  0x6a   : > { %p1862_p1 = pnand %p1860_p0, %p1855_p2 }
  0x6c   : > { %1865 = shalt.err (!%p1862_p1)
}
  0x6d   : > { %s2097_s25 = smov 64   ;;  %s2098_s4 = smov 4  }
  0x6e   : > { %389 = dma.hbm_to_vmem [thread:$0]  %s382_s20, 512, %s384_s8, %s2359_s30, %s2097_s25, %s2097_s25, %s2098_s4  }
  0x6f PF: > { %s3031_s7 = sld [smem:[#allocation26_spill]]  ;;  %s393_s12 = sand.u32 1, %s2087_s22  }
  0x70   : > { %s395_s0 = sand.u32 1, %s2055_s14   ;;  %s1231_s26 = smul.u32 36, %s2083_s21 }
  0x71   : > { %s1379_s24 = sshll.u32 %s395_s0, 3  ;;  %s421_s5 = sand.u32 1, %s2043_s11  }
  0x72   : > { %s397_s3 = scalar_lea.vmem [#allocation5], %s1379_s24  ;;  %s3032_s8 = sld [smem:[#allocation40_spill]] }
  0x73   : > { %s409_s28 = sshll.u32 %s397_s3, 4  ;;  %s3033_s17 = sld [smem:[#allocation41_spill]]  ;;  %s410_s28 = int_to_ptr.vmem [resolvable:$true] %s409_s28 }
  0x74   : > { %s1382_s21 = sshll.u32 %s421_s5, 3  ;;  %s394_s24 = scalar_lea.sflag [#allocation6], %s393_s12 }
  0x75   : > { %s1380_s15 = sshll.u32 %s3031_s7, 3  ;;  %s2099_s3 = smov 64  }
  0x76   : > { %s1232_s18 = sadd.s32 %s1380_s15, %s1231_s26  ;;  %s2100_s10 = smov 4  }
  0x77   : > { %s1381_s19 = sshll.u32 %s1232_s18, 2  ;;  %s423_s26 = scalar_lea.vmem [#allocation7], %s1382_s21 }
  0x78   : > { %s1234_s20 = scalar_lea.hbm %s3032_s8, %s1381_s19  ;;  %s436_s18 = sshll.u32 %s423_s26, 4  ;;  %s437_s18 = int_to_ptr.vmem [resolvable:$true] %s436_s18 }
  0x79   : > { %s1244_s22 = scalar_lea.hbm %s3033_s17, %s1381_s19  ;;  %s1235_s14 = scalar_lea.hbm %s1234_s20, 32 }
  0x7a   : > { %s1245_s0 = scalar_lea.hbm %s1244_s22, 40  ;;  %s407_s7 = sshll.u32 %s1235_s14, 4  ;;  %s408_s7 = int_to_ptr.hbm [resolvable:$true] %s407_s7 }
  0x7b   : > { %1574 = dma.hbm_to_vmem [thread:$0]  (%p2279_p12), %s408_s7, 128, %s410_s28, %s394_s24, %s2099_s3, %s2099_s3, %s2100_s10  }
  0x7c   : > { %s434_s15 = sshll.u32 %s1245_s0, 4  ;;  %p3034_p7 = scmp.ne.s32.totalorder %s3014_s27, 0  ;;  %s435_s15 = int_to_ptr.hbm [resolvable:$true] %s434_s15 }
  0x7e   : > { %1575 = dma.hbm_to_vmem [thread:$0]  (%p3034_p7), %s435_s15, 128, %s437_s18, %s394_s24, %s2099_s3, %s2099_s3, %s2100_s10  }
  0x7f PF: > { %448 = sbr.rel (%p2328_p4) target bundleno = 565 (0x235), region = 56 }
  0x84   : > { %s2395_s14 = sand.u32 1, %s2063_s16   ;;  %p3035_p12 = scmp.ne.s32.totalorder %s3009_s9, 0 }
  0x85   : > { %s1387_s17 = sshll.u32 %s2395_s14, 5  ;;  %s451_s22 = scalar_lea.sflag [#allocation3], %s2395_s14 }
  0x86   : > { %s2401_s21 = scalar_lea.vmem [#allocation2], %s1387_s17 }
  0x87   : > { %2008 = dma.done.wait (%p3035_p12), %s451_s22, 512  }
  0x88   : > { %2010 = vsyncadd (%p3035_p12), %s451_s22, 4294966784  ;;  %s460_s10 = sand.u32 1, %s2225_s23   ;;  %s462_s2 = sand.u32 1, %s2051_s13  }
  0x89   : > { %s2409_s27 = sshll.u32 %s462_s2, 3  ;;  %s461_s6 = scalar_lea.sflag [#allocation6], %s460_s10 }
  0x8a   : > { %s464_s29 = scalar_lea.vmem [#allocation5], %s2409_s27  ;;  %p3036_p4 = scmp.ne.s32.totalorder %s3013_s1, 0 }
  0x8c   : > { %2012 = dma.done.wait (%p3036_p4), %s461_s6, 128  }
  0x8d   : > { %2014 = vsyncadd (%p3036_p4), %s461_s6, 4294967168  ;;  %s3037_s12 = sld [smem:[#allocation20_spill]] }
  0x93   : > { %s472_s19 = sand.u32 1, %s3037_s12  }
  0x94   : > { %s2417_s9 = sshll.u32 %s472_s19, 3 }
  0x95   : > { %s474_s5 = scalar_lea.vmem [#allocation7], %s2417_s9 }
  0x96   : > { %2016 = dma.done.wait (%p2302_p10), %s461_s6, 128  }
  0x97   : > { %2018 = vsyncadd (%p2302_p10), %s461_s6, 4294967168 }
  0x98   : > { %2020 = dma.done.wait (%p65_p6), [#allocation9], 1280  }
  0x99   : > { %2022 = vsyncadd (%p65_p6), [#allocation9], 4294966016 }
  0x9a   : > { %2024 = dma.done.wait (%p65_p6), [#allocation12], 1024  }
  0x9b   : > { %2026 = vsyncadd (%p65_p6), [#allocation12], 4294966272  ;;  %v1518_v0 = vld [vmem:[#allocation8 + $0x38] sm:$0xff]  ;;  %v1517_v1 = vld [vmem:[#allocation8 + $0x30] sm:$0xff]  ;;  %s3039_s23 = sld [smem:[#allocation24_spill]]  ;;  %v765_v17 = vlaneseq  ;;  %v2101_v49 = vmov 0.0  }
  0x9c   : > { %663 = vmatpush.bf16.msra.mxu0 %v1518_v0  ;;  %1551 = vmatpush.bf16.msra.mxu2 %v1518_v0  ;;  %v1516_v2 = vld [vmem:[#allocation8 + $0x28] sm:$0xff]  ;;  %v1515_v3 = vld [vmem:[#allocation8 + $0x20] sm:$0xff]  ;;  %v1514_v4 = vld [vmem:[#allocation8 + $0x18] sm:$0xff]  ;;  %s3040_s8 = sld [smem:[#allocation43_spill]]  ;;  %s2876_s15 = scalar_lea.vmem [#allocation13], %s1387_s17 }
  0x9d   : > { %v1513_v5 = vld [vmem:[#allocation8 + $0x10] sm:$0xff]  ;;  %v1512_v6 = vld [vmem:[#allocation8 + $0x8] sm:$0xff]  ;;  %v1511_v7 = vld [vmem:[#allocation8] sm:$0xff]  ;;  %v2449_v23 = vshrl.u32 %v765_v17, 7  ;;  %s3053_s0 = sld [smem:[#allocation45_spill]]  ;;  %s1184_s19 = sshll.u32 %s2876_s15, 4  ;;  %s1185_s19 = int_to_ptr.vmem [resolvable:$true] %s1184_s19 }
  0x9e   : > { %v1505_v8 = vld [vmem:[%s2401_s21] sm:$0xff]  ;;  %v1507_v9 = vld [vmem:[%s2401_s21 + $0x10] sm:$0xff]  ;;  %v1506_v10 = vld [vmem:[%s2401_s21 + $0x8] sm:$0xff]  ;;  %s3059_s3 = sld [smem:[#allocation47_spill]]  ;;  %s1169_s27 = scalar_lea.sflag [#allocation4], %s2395_s14 }
  0x9f   : > { %v1508_v11 = vld [vmem:[%s2401_s21 + $0x18] sm:$0xff]  ;;  %v1509_v12 = vld [vmem:[%s464_s29] sm:$0xff]  ;;  %v767_v31 = vadd.s32 8, %v2449_v23  ;;  %v1523_v35 = vld [vmem:[#allocation11 + $0x20] sm:$0xff]  ;;  %vm768_vm5 = vcmp.gt.s32.totalorder %v2449_v23, 0  ;;  %vm792_vm7 = vcmp.lt.s32.totalorder %v2449_v23, 1 }
  0xa0   : > { %664 = vmatpush.bf16.msra.mxu0 %v1517_v1  ;;  %1552 = vmatpush.bf16.msra.mxu2 %v1517_v1  ;;  %v1510_v13 = vld [vmem:[%s474_s5] sm:$0xff]  ;;  %v1526_v16 = vld [vmem:[#allocation11 + $0x38] sm:$0xff]  ;;  %v1525_v19 = vld [vmem:[#allocation11 + $0x30] sm:$0xff]  ;;  %v2482_v50 = vsel %vm768_vm5, 1.0, %v2101_v49  ;;  %vm931_vm9 = vcmp.lt.s32.totalorder %v2449_v23, 7  ;;  %s3060_s26 = sld [smem:[#allocation25_spill]] }
  0xa1   : > { %1107 = vmatpush.bf16.msra.mxu1 %v1526_v16  ;;  %1559 = vmatpush.bf16.msra.mxu3 %v1526_v16  ;;  %s1450_s20 = sshll.u32 %s3039_s23, 2  ;;  %v1524_v27 = vld [vmem:[#allocation11 + $0x28] sm:$0xff]  ;;  %v2456_v29 = vld [vmem:[#allocation10] sm:$0xff]  ;;  %vm775_vm6 = vcmp.lt.s32.totalorder %v767_v31, 15  ;;  %v1522_v47 = vld [vmem:[#allocation11 + $0x18] sm:$0xff]  ;;  %s1527_s18 = sshll.u32 %s3039_s23, 3 }
  0xa2   : > { %v2443_v15 = vld [vmem:[%s3040_s8] ss:$0 sm:$0xff]  ;;  %v2447_v21 = vstv %s1450_s20  ;;  %v2460_v36 = vperm.slane %v2456_v29, 1  ;;  %v2467_v40 = vperm.slane %v2456_v29, 4  ;;  %v2470_v41 = vperm.slane %v2456_v29, 7  ;;  %v1520_v17 = vld [vmem:[#allocation11 + $0x8] sm:$0xff] }
  0xa3   : > { %v729_v28 = vadd.s32 2, %v2447_v21  ;;  %vm733_vm0 = vcmp.ge.s32.totalorder %v2447_v21, 1  ;;  %vm739_vm1 = vcmp.le.s32.totalorder %v2447_v21, 16  ;;  %v2486_v52 = vperm.slane %v2456_v29, 0  ;;  %v1521_v1 = vld [vmem:[#allocation11 + $0x10] sm:$0xff]  ;;  %s3061_s6 = sld [smem:[#allocation48_spill]] }
  0xa4   : > { %665 = vmatpush.bf16.msra.mxu0 %v1516_v2  ;;  %1553 = vmatpush.bf16.msra.mxu2 %v1516_v2  ;;  %vm745_vm2 = vmand %vm733_vm0, %vm739_vm1  ;;  %v728_v53 = vadd.s32 1, %v2447_v21  ;;  %v2492_v55 = vperm.slane %v2456_v29, 2  ;;  %v2495_v56 = vadd.s32 3, %v2447_v21  ;;  %v2498_v58 = vsel %vm775_vm6, 1.0, %v2101_v49 }
  0xa5   : > { %1108 = vmatpush.bf16.msra.mxu1 %v1525_v19  ;;  %1560 = vmatpush.bf16.msra.mxu3 %v1525_v19  ;;  %vm735_vm3 = vcmp.ge.s32.totalorder %v729_v28, 1  ;;  %vm741_vm4 = vcmp.le.s32.totalorder %v729_v28, 16  ;;  %v2501_v60 = vperm.slane %v2456_v29, 3  ;;  %v2508_v63 = vperm.slane %v2456_v29, 6 }
  0xa6   : > { %vm2476_vm8 = vmand %vm735_vm3, %vm741_vm4  ;;  %vm734_vm10 = vcmp.ge.s32.totalorder %v728_v53, 1  ;;  %vm740_vm11 = vcmp.le.s32.totalorder %v728_v53, 16  ;;  %vm736_vm12 = vcmp.ge.s32.totalorder %v2495_v56, 1  ;;  %vm742_vm13 = vcmp.le.s32.totalorder %v2495_v56, 16  ;;  %s1488_s17 = sshll.u32 %s3060_s26, 5 }
  0xa7   : > { %vm2545_vm14 = vmand %vm734_vm10, %vm740_vm11  ;;  %s1181_s22 = sadd.s32 %s1527_s18, %s1488_s17 }
  0xa8   : > { %666 = vmatpush.bf16.msra.mxu0 %v1515_v3  ;;  %1554 = vmatpush.bf16.msra.mxu2 %v1515_v3  ;;  %vm2605_vm15 = vmand %vm736_vm12, %vm742_vm13  ;;  %s1489_s10 = sshll.u32 %s1181_s22, 2 }
  0xa9   : > { %1109 = vmatpush.bf16.msra.mxu1 %v1524_v27  ;;  %1561 = vmatpush.bf16.msra.mxu3 %v1524_v27  ;;  %s1183_s12 = scalar_lea.hbm %s3061_s6, %s1489_s10  ;;  %s1943_s30 = scalar_lea.hbm %s3061_s6, 256 }
  0xaa   : > { %s1186_s9 = sshll.u32 %s1183_s12, 4  ;;  %s1187_s9 = int_to_ptr.hbm [resolvable:$true] %s1186_s9 }
  0xac   : > { %667 = vmatpush.bf16.msra.mxu0 %v1514_v4  ;;  %1555 = vmatpush.bf16.msra.mxu2 %v1514_v4 }
  0xad   : > { %1110 = vmatpush.bf16.msra.mxu1 %v1523_v35  ;;  %1562 = vmatpush.bf16.msra.mxu3 %v1523_v35 }
  0xb0   : > { %668 = vmatpush.bf16.msra.mxu0 %v1513_v5  ;;  %1556 = vmatpush.bf16.msra.mxu2 %v1513_v5 }
  0xb1   : > { %1111 = vmatpush.bf16.msra.mxu1 %v1522_v47  ;;  %1563 = vmatpush.bf16.msra.mxu3 %v1522_v47 }
  0xb4   : > { %669 = vmatpush.bf16.msra.mxu0 %v1512_v6  ;;  %1557 = vmatpush.bf16.msra.mxu2 %v1512_v6 }
  0xb5   : > { %1112 = vmatpush.bf16.msra.mxu1 %v1521_v1  ;;  %1564 = vmatpush.bf16.msra.mxu3 %v1521_v1 }
  0xb8   : > { %670 = vmatpush.bf16.msra.mxu0 %v1511_v7  ;;  %1558 = vmatpush.bf16.msra.mxu2 %v1511_v7 }
  0xb9   : > { %1113 = vmatpush.bf16.msra.mxu1 %v1520_v17  ;;  %1565 = vmatpush.bf16.msra.mxu3 %v1520_v17 }
  0xbb   : > { %671 = vmatmul.bf16.vlgmr.msra.gmra.mxu0 %v1505_v8  ;;  %681 = vmatmul.bf16.vlgmr.msra.gmra.mxu2 %v1507_v9 }
  0xcb   : > { %676 = vmatmul.bf16.gmra.mxu0 %v1506_v10  ;;  %686 = vmatmul.bf16.gmra.mxu2 %v1508_v11  ;;  %v2527_v11 = vperm.slane %v2456_v29, 5 }
  0xdb   : > { %691 = vmatmul.bf16.gmra.mxu2 %v1509_v12 }
  0xeb   : > { %696 = vmatmul.bf16.gmra.mxu2 %v1510_v13 }
 0x138   : > { %v672_v14 = vpop.f32.mrf.mxu0 }
 0x139   : > { %v673_v18 = vadd.f32 %v2443_v15, %v672_v14 }
 0x13b   : > { %v702_v24 = vmax.f32 %v673_v18, 0.0 }
 0x13d   : > { %v714_v32 = vmin.f32 %v702_v24, 6.0  ;;  %v2550_v24 = vadd.s32 4, %v2447_v21 }
 0x13e   : > { %v682_v20 = vpop.f32.mrf.mxu2 }
 0x13f   : > { %v683_v25 = vadd.f32 %v2443_v15, %v682_v20  ;;  %v751_v43 = vsel %vm745_vm2, %v714_v32, 0.0  ;;  %vm737_vm0 = vcmp.ge.s32.totalorder %v2550_v24, 1  ;;  %vm743_vm1 = vcmp.le.s32.totalorder %v2550_v24, 16 }
 0x140   : > { %v674_v22 = vpop.f32.mrf.mxu0  ;;  %v780_v57 = vrot.slane %v751_v43, 7  ;;  %v919_v61 = vrot.slane %v751_v43, 1  ;;  %v2522_v7 = vmul.f32 %v2460_v36, %v751_v43 }
 0x141   : > { %v675_v26 = vadd.f32 %v2443_v15, %v674_v22  ;;  %v706_v33 = vmax.f32 %v683_v25, 0.0 }
 0x143   : > { %v703_v30 = vmax.f32 %v675_v26, 0.0  ;;  %v718_v44 = vmin.f32 %v706_v33, 6.0 }
 0x145   : > { %v715_v34 = vmin.f32 %v703_v30, 6.0  ;;  %v2505_v62 = vsel %vm2476_vm8, %v718_v44, 0.0 }
 0x146   : > { %v684_v37 = vpop.f32.mrf.mxu2  ;;  %v782_v8 = vrot.slane %v2505_v62, 7  ;;  %v2536_v18 = vmul.f32 %v2460_v36, %v2505_v62  ;;  %v2540_v19 = vmul.f32 %v2467_v40, %v2505_v62  ;;  %v2554_v25 = vmul.f32 %v2470_v41, %v2505_v62 }
 0x147   : > { %v2462_v38 = vsel %vm745_vm2, %v715_v34, 0.0  ;;  %v685_v39 = vadd.f32 %v2443_v15, %v684_v37  ;;  %v921_v29 = vrot.slane %v2505_v62, 1  ;;  %vm2714_vm2 = vmand %vm737_vm0, %vm743_vm1 }
 0x148   : > { %v677_v42 = vpop.f32.mrf.mxu0  ;;  %v786_v51 = vrot.slane %v2462_v38, 7  ;;  %v925_v54 = vrot.slane %v2462_v38, 1  ;;  %3043 = vst [vmem:[#allocation37_spill] sm:$0xff] %v2536_v18  ;;  %v2563_v31 = vmul.f32 %v2460_v36, %v2462_v38 }
 0x149   : > { %v707_v45 = vmax.f32 %v685_v39, 0.0  ;;  %v678_v46 = vadd.f32 %v2443_v15, %v677_v42  ;;  %v1519_v39 = vld [vmem:[#allocation11] sm:$0xff] }
 0x14a   : > { %v799_v2 = vsel %vm792_vm7, %v786_v51, %v780_v57  ;;  %v938_v5 = vsel %vm931_vm9, %v925_v54, %v919_v61  ;;  %v793_v12 = vsel %vm792_vm7, %v780_v57, %v786_v51  ;;  %v932_v14 = vsel %vm931_vm9, %v919_v61, %v925_v54  ;;  %1114 = vmatpush.bf16.msra.mxu1 %v1519_v39 }
 0x14b   : > { %v719_v59 = vmin.f32 %v707_v45, 6.0  ;;  %v704_v0 = vmax.f32 %v678_v46, 0.0  ;;  %v805_v13 = vmul.f32 %v2482_v50, %v799_v2  ;;  %v945_v20 = vmul.f32 %v2498_v58, %v938_v5  ;;  %1566 = vmatpush.bf16.msra.mxu3 %v1519_v39 }
 0x14c   : > { %v819_v30 = vmul.f32 %v2486_v52, %v793_v12  ;;  %v2566_v32 = vmul.f32 %v2492_v55, %v932_v14 }
 0x14d   : > { %v2514_v3 = vsel %vm2476_vm8, %v719_v59, 0.0  ;;  %v716_v16 = vmin.f32 %v704_v0, 6.0  ;;  %v818_v33 = vmul.f32 %v2486_v52, %v805_v13  ;;  %v2585_v45 = vmul.f32 %v2492_v55, %v945_v20 }
 0x14e   : > { %v687_v4 = vpop.f32.mrf.mxu2  ;;  %v788_v6 = vrot.slane %v2514_v3, 7  ;;  %v2578_v38 = vmul.f32 %v2460_v36, %v2514_v3  ;;  %v2582_v43 = vmul.f32 %v2467_v40, %v2514_v3  ;;  %v927_v46 = vrot.slane %v2514_v3, 1 }
 0x14f   : > { %v688_v9 = vadd.f32 %v2443_v15, %v687_v4  ;;  %v2573_v35 = vsel %vm2545_vm14, %v716_v16, 0.0  ;;  %v2594_v53 = vmul.f32 %v2470_v41, %v2514_v3 }
 0x150   : > { %v679_v10 = vpop.f32.mrf.mxu0  ;;  %v801_v26 = vsel %vm792_vm7, %v788_v6, %v782_v8  ;;  %v795_v34 = vsel %vm792_vm7, %v782_v8, %v788_v6  ;;  %v781_v54 = vrot.slane %v2573_v35, 7  ;;  %v2599_v57 = vmul.f32 %v2460_v36, %v2573_v35 }
 0x151   : > { %v708_v27 = vmax.f32 %v688_v9, 0.0  ;;  %v680_v28 = vadd.f32 %v2443_v15, %v679_v10  ;;  %v809_v42 = vmul.f32 %v2482_v50, %v801_v26  ;;  %v2590_v51 = vmul.f32 %v2486_v52, %v795_v34  ;;  %v2631_v10 = vld [vmem:[#allocation10 + $0x8] ss:$0 sm:$0xff] }
 0x152   : > { %v838_v61 = vmul.f32 %v2501_v60, %v795_v34  ;;  %v2612_v62 = vmul.f32 %v2467_v40, %v2573_v35  ;;  %v2986_v56 = vrot.slane %v2573_v35, 1  ;;  %v853_v4 = vmul.f32 %v2508_v63, %v795_v34 }
 0x153   : > { %v705_v37 = vmax.f32 %v680_v28, 0.0  ;;  %v720_v47 = vmin.f32 %v708_v27, 6.0  ;;  %v2619_v2 = vmul.f32 %v2486_v52, %v809_v42  ;;  %v852_v5 = vmul.f32 %v2508_v63, %v809_v42 }
 0x154   : > { %v940_v9 = vsel %vm931_vm9, %v927_v46, %v921_v29  ;;  %v837_v14 = vmul.f32 %v2501_v60, %v809_v42  ;;  %v934_v16 = vsel %vm931_vm9, %v921_v29, %v927_v46  ;;  %v2647_v26 = vadd.s32 5, %v2447_v21 }
 0x155   : > { %v717_v48 = vmin.f32 %v705_v37, 6.0  ;;  %v2627_v6 = vsel %vm2605_vm15, %v720_v47, 0.0  ;;  %v949_v29 = vmul.f32 %v2498_v58, %v940_v9  ;;  %v2658_v21 = vmul.f32 %v2631_v10, %v934_v16 }
 0x156   : > { %v689_v44 = vpop.f32.mrf.mxu2  ;;  %v783_v27 = vrot.slane %v2627_v6, 7  ;;  %vm738_vm3 = vcmp.ge.s32.totalorder %v2647_v26, 1  ;;  %vm744_vm4 = vcmp.le.s32.totalorder %v2647_v26, 16 }
 0x157   : > { %v690_v49 = vadd.f32 %v2443_v15, %v689_v44  ;;  %v2616_v0 = vsel %vm2545_vm14, %v717_v48, 0.0  ;;  %vm2801_vm5 = vmand %vm738_vm3, %vm744_vm4 }
 0x158   : > { %v787_v3 = vrot.slane %v2616_v0, 7  ;;  %v926_v44 = vrot.slane %v2616_v0, 1 }
 0x159   : > { %v709_v1 = vmax.f32 %v690_v49, 0.0  ;;  %v2666_v49 = vmul.f32 %v2527_v11, %v934_v16 }
 0x15a   : > { %v794_v12 = vsel %vm792_vm7, %v781_v54, %v787_v3  ;;  %v800_v13 = vsel %vm792_vm7, %v787_v3, %v781_v54  ;;  %v2674_v3 = vmul.f32 %v2467_v40, %v2627_v6 }
 0x15b   : > { %v721_v8 = vmin.f32 %v709_v1, 6.0  ;;  %v807_v17 = vmul.f32 %v2482_v50, %v800_v13  ;;  %v836_v20 = vmul.f32 %v2501_v60, %v794_v12  ;;  %v821_v28 = vmul.f32 %v2486_v52, %v794_v12 }
 0x15c   : > { %3048 = vst [vmem:[#allocation38_spill] sm:$0xff] %v2674_v3  ;;  %v977_v3 = vmul.f32 %v2527_v11, %v949_v29 }
 0x15d   : > { %v2644_v22 = vsel %vm2605_vm15, %v721_v8, 0.0  ;;  %v835_v39 = vmul.f32 %v2501_v60, %v807_v17  ;;  %v844_v42 = vadd.f32 %v836_v20, %v819_v30  ;;  %v820_v54 = vmul.f32 %v2486_v52, %v807_v17 }
 0x15e   : > { %v789_v34 = vrot.slane %v2644_v22, 7  ;;  %v692_v37 = vpop.f32.mrf.mxu2  ;;  %v2678_v8 = vmul.f32 %v2470_v41, %v2627_v6  ;;  %v846_v9 = vadd.f32 %v838_v61, %v821_v28  ;;  %v872_v61 = vmul.f32 %v2460_v36, %v2616_v0 }
 0x15f   : > { %v693_v48 = vadd.f32 %v2443_v15, %v692_v37  ;;  %v843_v59 = vadd.f32 %v835_v39, %v818_v33  ;;  %v861_v30 = vadd.f32 %v853_v4, %v844_v42  ;;  %v887_v33 = vmul.f32 %v2467_v40, %v2616_v0 }
 0x160   : > { %v796_v46 = vsel %vm792_vm7, %v783_v27, %v789_v34  ;;  %v802_v47 = vsel %vm792_vm7, %v789_v34, %v783_v27  ;;  %v939_v4 = vsel %vm931_vm9, %v926_v44, %v2986_v56  ;;  %v845_v34 = vadd.f32 %v837_v14, %v820_v54 }
 0x161   : > { %v2670_v1 = vmul.f32 %v2482_v50, %v802_v47  ;;  %v855_v12 = vmul.f32 %v2508_v63, %v796_v46  ;;  %v878_v13 = vadd.f32 %v2563_v31, %v861_v30  ;;  %v710_v28 = vmax.f32 %v693_v48, 0.0 }
 0x162   : > { %v928_v37 = vrot.slane %v2644_v22, 1  ;;  %v860_v39 = vadd.f32 %v852_v5, %v843_v59  ;;  %v947_v30 = vmul.f32 %v2498_v58, %v939_v4  ;;  %v992_v56 = vmul.f32 %v2631_v10, %v949_v29 }
 0x163   : > { %v854_v17 = vmul.f32 %v2508_v63, %v2670_v1  ;;  %v863_v27 = vadd.f32 %v855_v12, %v846_v9  ;;  %v895_v31 = vadd.f32 %v887_v33, %v878_v13  ;;  %v906_v5 = vmul.f32 %v2470_v41, %v2644_v22 }
 0x164   : > { %v877_v0 = vadd.f32 %v2522_v7, %v860_v39  ;;  %v722_v54 = vmin.f32 %v710_v28, 6.0  ;;  %v2704_v59 = vmul.f32 %v2492_v55, %v934_v16  ;;  %v3049_v9 = vrot.slane %v2627_v6, 1 }
 0x165   : > { %v880_v42 = vadd.f32 %v872_v61, %v863_v27  ;;  %v912_v20 = vadd.f32 %v2594_v53, %v895_v31  ;;  %v862_v48 = vadd.f32 %v854_v17, %v845_v34  ;;  %v975_v16 = vmul.f32 %v2527_v11, %v947_v30 }
 0x166   : > { %v694_v47 = vpop.f32.mrf.mxu2  ;;  %v941_v12 = vsel %vm931_vm9, %v928_v37, %v3049_v9  ;;  %v2724_v13 = vmul.f32 %v2492_v55, %v949_v29  ;;  %v894_v17 = vadd.f32 %v2612_v62, %v877_v0  ;;  %v2729_v61 = vmul.f32 %v2486_v52, %v796_v46 }
 0x167   : > { %v695_v18 = vadd.f32 %v2443_v15, %v694_v47  ;;  %v897_v14 = vadd.f32 %v2582_v43, %v880_v42  ;;  %v3052_v43 = vrot.slane %v2573_v35, 1  ;;  %v966_v24 = vadd.f32 %v2585_v45, %v912_v20  ;;  %v2743_v45 = vld [vmem:[%s3053_s0] ss:$0 sm:$0xff] }
 0x168   : > { %v891_v35 = vmul.f32 %v2467_v40, %v2644_v22  ;;  %v879_v27 = vadd.f32 %v2599_v57, %v862_v48  ;;  %v2737_v29 = vsel %vm2714_vm2, %v722_v54, 0.0  ;;  %v840_v20 = vmul.f32 %v2501_v60, %v796_v46 }
 0x169   : > { %v933_v53 = vsel %vm931_vm9, %v3052_v43, %v926_v44  ;;  %v914_v33 = vadd.f32 %v906_v5, %v897_v14  ;;  %v711_v4 = vmax.f32 %v695_v18, 0.0  ;;  %v960_v44 = vmul.f32 %v2492_v55, %v947_v30 }
 0x16a   : > { %v911_v18 = vadd.f32 %v2554_v25, %v894_v17  ;;  %v983_v62 = vadd.f32 %v975_v16, %v966_v24  ;;  %v2747_v34 = vmul.f32 %v2498_v58, %v941_v12  ;;  %v896_v57 = vadd.f32 %v2540_v19, %v879_v27 }
 0x16b   : > { %v723_v28 = vmin.f32 %v711_v4, 6.0  ;;  %v968_v31 = vadd.f32 %v960_v44, %v914_v33  ;;  %v974_v47 = vmul.f32 %v2527_v11, %v933_v53  ;;  %v839_v30 = vmul.f32 %v2501_v60, %v2670_v1 }
 0x16c   : > { %v965_v42 = vadd.f32 %v2566_v32, %v911_v18  ;;  %v1000_v46 = vadd.f32 %v992_v56, %v983_v62  ;;  %v784_v0 = vrot.slane %v2737_v29, 7  ;;  %v959_v19 = vmul.f32 %v2492_v55, %v933_v53 }
 0x16d   : > { %v2754_v25 = vsel %vm2714_vm2, %v723_v28, 0.0  ;;  %v913_v9 = vadd.f32 %v2678_v8, %v896_v57  ;;  %v985_v12 = vadd.f32 %v977_v3, %v968_v31  ;;  %v994_v7 = vmul.f32 %v2631_v10, %v2747_v34 }
 0x16e   : > { %v697_v39 = vpop.f32.mrf.mxu2  ;;  %v790_v48 = vrot.slane %v2754_v25, 7  ;;  %v982_v5 = vadd.f32 %v974_v47, %v965_v42  ;;  %v1012_v54 = vadd.f32 %v2743_v45, %v1000_v46  ;;  %v848_v53 = vadd.f32 %v840_v20, %v2590_v51 }
 0x16f   : > { %v698_v14 = vadd.f32 %v2443_v15, %v697_v39  ;;  %v3054_v33 = vrot.slane %v2627_v6, 1  ;;  %v967_v24 = vadd.f32 %v959_v19, %v913_v9  ;;  %v1002_v3 = vadd.f32 %v994_v7, %v985_v12 }
 0x170   : > { %v797_v32 = vsel %vm792_vm7, %v784_v0, %v790_v48  ;;  %v803_v56 = vsel %vm792_vm7, %v790_v48, %v784_v0  ;;  %v999_v17 = vadd.f32 %v2658_v21, %v982_v5  ;;  %v847_v27 = vadd.f32 %v839_v30, %v2619_v2 }
 0x171   : > { %v813_v43 = vmul.f32 %v2482_v50, %v803_v56  ;;  %v857_v16 = vmul.f32 %v2508_v63, %v797_v32  ;;  %v2779_v8 = vsel %vm931_vm9, %v3054_v33, %v928_v37  ;;  %v712_v4 = vmax.f32 %v698_v14, 0.0 }
 0x172   : > { %v1020_v18 = vmax.f32 %v1012_v54, 0.0  ;;  %v824_v51 = vmul.f32 %v2486_v52, %v2670_v1  ;;  %v1011_v62 = vadd.f32 %v2743_v45, %v999_v17  ;;  %v984_v20 = vadd.f32 %v2666_v49, %v967_v24  ;;  %v3057_v54 = vld [vmem:[#allocation37_spill] sm:$0xff] }
 0x173   : > { %v856_v44 = vmul.f32 %v2508_v63, %v813_v43  ;;  %v865_v28 = vadd.f32 %v857_v16, %v848_v53  ;;  %v993_v37 = vmul.f32 %v2631_v10, %v2779_v8  ;;  %v929_v31 = vrot.slane %v2754_v25, 1  ;;  %v3058_v16 = vld [vmem:[#allocation38_spill] sm:$0xff] }
 0x174   : > { %v1014_v39 = vadd.f32 %v2743_v45, %v1002_v3  ;;  %v724_v42 = vmin.f32 %v712_v4, 6.0  ;;  %v1019_v46 = vmax.f32 %v1011_v62, 0.0  ;;  %v923_v1 = vrot.slane %v2737_v29, 1 }
 0x175   : > { %v864_v57 = vadd.f32 %v856_v44, %v847_v27  ;;  %v882_v21 = vadd.f32 %v2578_v38, %v865_v28  ;;  %v1001_v52 = vadd.f32 %v993_v37, %v984_v20  ;;  %v908_v49 = vmul.f32 %v2470_v41, %v2754_v25 }
 0x176   : > { %v699_v2 = vpop.f32.mrf.mxu2  ;;  %v1028_v0 = vmin.f32 %v1020_v18, 6.0  ;;  %v1027_v19 = vmin.f32 %v1019_v46, 6.0  ;;  %v1022_v14 = vmax.f32 %v1014_v39, 0.0  ;;  %v942_v56 = vsel %vm931_vm9, %v929_v31, %v923_v1 }
 0x177   : > { %v700_v47 = vadd.f32 %v2443_v15, %v699_v2  ;;  %v899_v30 = vadd.f32 %v891_v35, %v882_v21  ;;  %v1013_v15 = vadd.f32 %v2743_v45, %v1001_v52  ;;  %v907_v35 = vmul.f32 %v2470_v41, %v2737_v29 }
 0x178   : > { %v881_v9 = vadd.f32 %v3057_v54, %v864_v57  ;;  %v2813_v26 = vsel %vm2801_vm5, %v724_v42, 0.0  ;;  %v1035_v7 = vpack.c.bf16 %v1028_v0, %v1027_v19  ;;  %v953_v4 = vmul.f32 %v2498_v58, %v942_v56 }
 0x179   : > { %v713_v48 = vmax.f32 %v700_v47, 0.0  ;;  %v916_v5 = vadd.f32 %v908_v49, %v899_v30  ;;  %v1021_v53 = vmax.f32 %v1013_v15, 0.0  ;;  %v979_v24 = vmul.f32 %v2527_v11, %v2747_v34 }
 0x17a   : > { %v898_v33 = vadd.f32 %v3058_v16, %v881_v9  ;;  %v842_v3 = vmul.f32 %v2501_v60, %v797_v32  ;;  %1115 = vmatmul.bf16.vlgmr.msra.gmra.mxu1 %v1035_v7  ;;  %v1030_v28 = vmin.f32 %v1022_v14, 6.0  ;;  %v785_v18 = vrot.slane %v2813_v26, 7 }
 0x17b   : > { %v725_v12 = vmin.f32 %v713_v48, 6.0  ;;  %v970_v17 = vadd.f32 %v2724_v13, %v916_v5  ;;  %v1029_v44 = vmin.f32 %v1021_v53, 6.0  ;;  %v936_v37 = vsel %vm931_vm9, %v923_v1, %v929_v31 }
 0x17c   : > { %v915_v20 = vadd.f32 %v907_v35, %v898_v33  ;;  %v841_v13 = vmul.f32 %v2501_v60, %v813_v43  ;;  %v996_v2 = vmul.f32 %v2631_v10, %v953_v4  ;;  %v978_v47 = vmul.f32 %v2527_v11, %v2779_v8 }
 0x17d   : > { %v762_v27 = vsel %vm2801_vm5, %v725_v12, 0.0  ;;  %v1036_v57 = vpack.c.bf16 %v1030_v28, %v1029_v44  ;;  %v987_v21 = vadd.f32 %v979_v24, %v970_v17  ;;  %v850_v46 = vadd.f32 %v842_v3, %v2729_v61 }
 0x17e   : > { %v791_v62 = vrot.slane %v762_v27, 7  ;;  %v969_v42 = vadd.f32 %v2704_v59, %v915_v20  ;;  %v876_v52 = vmul.f32 %v2460_v36, %v2644_v22  ;;  %v930_v1 = vrot.slane %v762_v27, 1 }
 0x17f   : > { %1120 = vmatmul.bf16.vlgmr.msra.gmra.mxu3 %v1036_v57  ;;  %v1004_v43 = vadd.f32 %v996_v2, %v987_v21  ;;  %v995_v49 = vmul.f32 %v2631_v10, %v936_v37  ;;  %v849_v38 = vadd.f32 %v841_v13, %v824_v51  ;;  %v924_v61 = vrot.slane %v2813_v26, 1  ;;  %v549_v57 = vld [vmem:[%s2401_s21 + $0x8] sm:$0xff]  }
 0x180   : > { %v798_v32 = vsel %vm792_vm7, %v785_v18, %v791_v62  ;;  %v804_v39 = vsel %vm792_vm7, %v791_v62, %v785_v18  ;;  %v986_v30 = vadd.f32 %v978_v47, %v969_v42  ;;  %v875_v19 = vmul.f32 %v2460_v36, %v2627_v6 }
 0x181   : > { %v815_v31 = vmul.f32 %v2482_v50, %v804_v39  ;;  %v859_v60 = vmul.f32 %v2508_v63, %v798_v32  ;;  %v1016_v48 = vadd.f32 %v2743_v45, %v1004_v43  ;;  %v893_v15 = vmul.f32 %v2467_v40, %v2754_v25 }
 0x182   : > { %v1003_v50 = vadd.f32 %v995_v49, %v986_v30  ;;  %v892_v35 = vmul.f32 %v2467_v40, %v2737_v29  ;;  %v910_v54 = vmul.f32 %v2470_v41, %v762_v27  ;;  %v964_v36 = vmul.f32 %v2492_v55, %v2747_v34 }
 0x183   : > { %v858_v59 = vmul.f32 %v2508_v63, %v815_v31  ;;  %v867_v0 = vadd.f32 %v859_v60, %v850_v46  ;;  %v943_v63 = vsel %vm931_vm9, %v930_v1, %v924_v61  ;;  %v1024_v9 = vmax.f32 %v1016_v48, 0.0  ;;  %v551_v60 = vld [vmem:[%s2401_s21 + $0x10] sm:$0xff]  }
 0x184   : > { %v1015_v51 = vadd.f32 %v2743_v45, %v1003_v50  ;;  %v909_v25 = vmul.f32 %v2470_v41, %v2813_v26  ;;  %v955_v40 = vmul.f32 %v2498_v58, %v943_v63  ;;  %v963_v53 = vmul.f32 %v2492_v55, %v2779_v8 }
 0x185   : > { %v866_v22 = vadd.f32 %v858_v59, %v849_v38  ;;  %v884_v14 = vadd.f32 %v876_v52, %v867_v0  ;;  %v1032_v33 = vmin.f32 %v1024_v9, 6.0  ;;  %v981_v24 = vmul.f32 %v2527_v11, %v953_v4 }
 0x186   : > { %v1023_v6 = vmax.f32 %v1015_v51, 0.0  ;;  %v937_v34 = vsel %vm931_vm9, %v924_v61, %v930_v1  ;;  %v980_v3 = vmul.f32 %v2527_v11, %v936_v37  ;;  %v998_v44 = vmul.f32 %v2631_v10, %v955_v40  ;;  %v553_v61 = vld [vmem:[%s2401_s21 + $0x18] sm:$0xff]  }
 0x187   : > { %v901_v5 = vadd.f32 %v893_v15, %v884_v14  ;;  %v883_v56 = vadd.f32 %v875_v19, %v866_v22  ;;  %v997_v28 = vmul.f32 %v2631_v10, %v937_v34  ;;  %v1737_v10 = vld [vmem:[%s3059_s3] ss:$0 sm:$0xff]  ;;  %v1136_v2 = vunpack.c.l.bf16 %v549_v57 }
 0x188   : > { %v1031_v29 = vmin.f32 %v1023_v6, 6.0  ;;  %v1137_v32 = vunpack.c.h.bf16 %v549_v57  ;;  %v1138_v52 = vunpack.c.l.bf16 %v551_v60  ;;  %v1139_v1 = vunpack.c.h.bf16 %v551_v60 }
 0x189   : > { %v918_v12 = vadd.f32 %v910_v54, %v901_v5  ;;  %v900_v7 = vadd.f32 %v892_v35, %v883_v56  ;;  %v1140_v19 = vunpack.c.l.bf16 %v553_v61  ;;  %v1141_v15 = vunpack.c.h.bf16 %v553_v61  ;;  %v555_v54 = vld [vmem:[%s464_s29] sm:$0xff]   ;;  %s1937_s29 = sshra.s32 %s1187_s9, 4  ;;  %s1938_s29 = int_to_ptr.hbm [resolvable:$true] %s1937_s29 }
 0x18a   : > { %v1037_v27 = vpack.c.bf16 %v1032_v33, %v1031_v29  ;;  %v1142_v56 = vunpack.c.l.bf16 %v555_v54  ;;  %s1939_s5 = scalar_lea.hbm %s1938_s29, 32  ;;  %p1944_p3 = scmp.lt.s32.totalorder %s1938_s29, %s3061_s6 }
 0x18b   : > { %v972_v16 = vadd.f32 %v964_v36, %v918_v12  ;;  %v917_v17 = vadd.f32 %v909_v25, %v900_v7  ;;  %v1143_v36 = vunpack.c.h.bf16 %v555_v54  ;;  %p1940_p6 = scmp.ne.s32.totalorder %s1938_s29, %s1939_s5  ;;  %p1945_p8 = scmp.lt.s32.totalorder %s1943_s30, %s1939_s5 }
 0x18d   : > { %v971_v41 = vadd.f32 %v963_v53, %v917_v17  ;;  %v989_v26 = vadd.f32 %v981_v24, %v972_v16  ;;  %p1941_p10 = pnand %p1940_p6, %p2313_p5  ;;  %p1946_p11 = por %p1945_p8, %p1944_p3 }
 0x18f   : > { %v988_v58 = vadd.f32 %v980_v3, %v971_v41  ;;  %v1006_v55 = vadd.f32 %v998_v44, %v989_v26  ;;  %1125 = vmatmul.bf16.gmra.mxu3 %v1037_v27  ;;  %p1942_p13 = pneg %p1941_p10 }
 0x191   : > { %v1005_v8 = vadd.f32 %v997_v28, %v988_v58  ;;  %v1018_v4 = vadd.f32 %v2743_v45, %v1006_v55  ;;  %p1947_p2 = pnand %p1946_p11, %p1942_p13 }
 0x193   : > { %v1017_v18 = vadd.f32 %v2743_v45, %v1005_v8  ;;  %v1026_v62 = vmax.f32 %v1018_v4, 0.0 }
 0x195   : > { %v1025_v23 = vmax.f32 %v1017_v18, 0.0  ;;  %v1034_v11 = vmin.f32 %v1026_v62, 6.0 }
 0x197   : > { %v1033_v20 = vmin.f32 %v1025_v23, 6.0 }
 0x199   : > { %v1038_v37 = vpack.c.bf16 %v1034_v11, %v1033_v20 }
 0x19f   : > { %1130 = vmatmul.bf16.gmra.mxu3 %v1038_v37 }
 0x1f7   : > { %v1116_v13 = vpop.f32.mrf.mxu1 }
 0x1f8   : > { %v1117_v21 = vadd.f32 %v1737_v10, %v1116_v13 }
 0x1fa   : > { %v1144_v47 = vadd.f32 %v1136_v2, %v1117_v21 }
 0x1ff   : > { %v1118_v39 = vpop.f32.mrf.mxu1 }
 0x200   : > { %v1119_v42 = vadd.f32 %v1737_v10, %v1118_v39 }
 0x202   : > { %v1121_v45 = vpop.f32.mrf.mxu3  ;;  %v1145_v46 = vadd.f32 %v1137_v32, %v1119_v42 }
 0x203   : > { %v1122_v43 = vadd.f32 %v1737_v10, %v1121_v45 }
 0x204   : > { %v1531_v31 = vpack.c.bf16 %v1145_v46, %v1144_v47 }
 0x205   : > { %v1146_v38 = vadd.f32 %v1138_v52, %v1122_v43 }
 0x206   : > { %1532 = vst [vmem:[%s2876_s15] sm:$0xff] %v1531_v31  }
 0x20a   : > { %v1123_v30 = vpop.f32.mrf.mxu3 }
 0x20b   : > { %v1124_v49 = vadd.f32 %v1737_v10, %v1123_v30 }
 0x20d   : > { %v1147_v59 = vadd.f32 %v1139_v1, %v1124_v49 }
 0x20f   : > { %v1536_v0 = vpack.c.bf16 %v1147_v59, %v1146_v38 }
 0x211   : > { %1548 = vst [vmem:[%s2876_s15 + $0x8] sm:$0xff] %v1536_v0  }
 0x212   : > { %v1126_v48 = vpop.f32.mrf.mxu3 }
 0x213   : > { %v1127_v50 = vadd.f32 %v1737_v10, %v1126_v48 }
 0x215   : > { %v1148_v35 = vadd.f32 %v1140_v19, %v1127_v50 }
 0x21a   : > { %v1128_v22 = vpop.f32.mrf.mxu3 }
 0x21b   : > { %v1129_v14 = vadd.f32 %v1737_v10, %v1128_v22 }
 0x21d   : > { %v1149_v63 = vadd.f32 %v1141_v15, %v1129_v14 }
 0x21f   : > { %v1541_v51 = vpack.c.bf16 %v1149_v63, %v1148_v35 }
 0x221   : > { %1549 = vst [vmem:[%s2876_s15 + $0x10] sm:$0xff] %v1541_v51  }
 0x222   : > { %v1131_v5 = vpop.f32.mrf.mxu3 }
 0x223   : > { %v1132_v9 = vadd.f32 %v1737_v10, %v1131_v5 }
 0x225   : > { %v1150_v12 = vadd.f32 %v1142_v56, %v1132_v9 }
 0x22a   : > { %v1133_v6 = vpop.f32.mrf.mxu3 }
 0x22b   : > { %v1134_v25 = vadd.f32 %v1737_v10, %v1133_v6 }
 0x22d   : > { %v1151_v7 = vadd.f32 %v1143_v36, %v1134_v25 }
 0x22f   : > { %v1546_v40 = vpack.c.bf16 %v1151_v7, %v1150_v12 }
 0x231   : > { %1550 = vst [vmem:[%s2876_s15 + $0x18] sm:$0xff] %v1546_v40  }
 0x232   : > { %1950 = shalt.err (!%p1947_p2)
}
 0x233   : > { %s2102_s14 = smov 64   ;;  %s2103_s25 = smov 4  }
 0x234   : > { %1585 = dma.vmem_to_hbm [thread:$0]  (%p2313_p5), %s1185_s19, 512, %s1187_s9, %s1169_s27, %s2102_s14, %s2102_s14, %s2103_s25  }
 0x235 PF: > { %s3063_s4 = sld [smem:[#allocation28_spill]] }
 0x236   : > { %s3064_s0 = sld [smem:[#allocation22_spill]] }
 0x23b   : > { %p1607_p0 = scmp.ge.s32.totalorder %s3063_s4, 2 }
 0x23c   : > { %s1201_s24 = sand.u32 1, %s3064_s0  }
 0x23d   : > { %p1598_p1 = pnand %p1607_p0, %p2324_p9  ;;  %s1202_s3 = scalar_lea.sflag [#allocation4], %s1201_s24 }
 0x23f   : > { %p1599_p7 = pneg %p1598_p1 }
 0x241   : > { %2028 = dma.done.wait (%p1599_p7), %s1202_s3, 512  }
 0x242   : > { %2030 = vsyncadd (%p1599_p7), %s1202_s3, 4294966784  ;;  %s30_s22 = sadd.s32 1, %s3063_s4   ;;  %s3067_s30 = sld [smem:[#allocation20_spill]] }
 0x243   : > { %p2907_p12 = scmp.ge.s32.totalorder %s30_s22, 10   ;;  %s3068_s26 = sld [smem:[#allocation34_spill]] }
 0x244   : > { %s3069_s18 = sld [smem:[#allocation21_spill]]  ;;  %s3078_s10 = smov %s2043_s11 }
 0x245   : > { %s3070_s14 = sld [smem:[#allocation32_spill]]  ;;  %s3080_s12 = smov %s2051_s13 }
 0x246   : > { %s3071_s17 = sld [smem:[#allocation23_spill]]  ;;  %s3082_s15 = smov %s2063_s16 }
 0x247   : > { %s3072_s21 = sld [smem:[#allocation31_spill]] }
 0x248   : > { %s3073_s2 = sld [smem:[#allocation26_spill]] }
 0x249   : > { %s3074_s19 = sld [smem:[#allocation27_spill]]  ;;  %s3079_s11 = smov %s3068_s26 }
 0x24a   : > { %s3075_s20 = sld [smem:[#allocation29_spill]]  ;;  %s3081_s13 = smov %s3069_s18 }
 0x24b   : > { %s3076_s28 = sld [smem:[#allocation30_spill]] }
 0x24c   : > { %s3083_s16 = smov %s3071_s17 }
 0x24d   : > { %s3084_s17 = smov %s3072_s21  ;;  %29 = sbr.rel (!%p2907_p12) target bundleno = 25 (0x19), region = 137 }
 0x24e   : > { %s3085_s18 = smov %s3073_s2 }
 0x251   : > { %s3086_s21 = smov %s3076_s28 }
 0x252   :  { %1208 = vsyncpa [#allocation3], 1 }
 0x253   :  { %1210 = vsyncpa [#allocation3 + $0x1], 1 }
 0x254   :  { %1211 = vsyncpa [#allocation6], 1 }
 0x255   :  { %1213 = vsyncpa [#allocation6 + $0x1], 1 }
 0x256   :  { %1214 = vsyncpa [#allocation9], 1 }
 0x257   :  { %1215 = vsyncpa [#allocation12], 1 }
 0x258   :  { %1216 = vsyncpa [#allocation4], 1 }
 0x259   :  { %1218 = vsyncpa [#allocation4 + $0x1], 1 }

</bundles_post_ra>
